<compile_context>
chip_gen: v5e
topology: v5e:2x2
jax: 0.10.0
libtpu: 0.0.40
codegen_flags: <defaults>
</compile_context>

<pallas_src>
import numpy as np
import jax
import jax.numpy as jnp
from jax.experimental import pallas as pl
from jax.experimental.pallas import tpu as pltpu

HIDDEN_IN = 400
HIDDEN_OUT = 300
HIDDEN_IN_PAD = 512     # 400 -> next multiple of 128
HIDDEN_OUT_PAD = 384    # 300 -> next multiple of 128
OUT_PAD = 128           # lane-dense final output; real column is col 0
NEG_SLOPE = 0.01
BN_EPS = 1e-5


def _leaky_relu(x):
    return jnp.where(x >= 0, x, NEG_SLOPE * x)


def critic_kernel(state_ref, actions_ref,
                  w0_ref, gamma_ref, beta_ref,
                  w1s_ref, w1a_ref, b1_ref,
                  w2_ref, b2_ref,
                  out_ref):
    # MXU operands in bf16, accumulation in f32; all elementwise math in f32.
    x = state_ref[...].astype(jnp.bfloat16)     # (B, S)
    a = actions_ref[...]                        # (B, A) f32 (VPU path only)

    # --- fc[0]: Linear(input_size, 512-padded), bias omitted (absorbed by BN) ---
    h0 = jnp.dot(x, w0_ref[...], preferred_element_type=jnp.float32)   # (B,512) f32

    # --- BatchNorm1d (training-mode batch stats), fused scale/shift ---
    inv_b = 1.0 / h0.shape[0]
    mean = jnp.sum(h0, axis=0, keepdims=True) * inv_b
    mean_sq = jnp.sum(h0 * h0, axis=0, keepdims=True) * inv_b
    var = jnp.maximum(mean_sq - mean * mean, 0.0)
    scale = gamma_ref[...] * jax.lax.rsqrt(var + BN_EPS)   # padded lanes: gamma=0 -> 0
    shift = beta_ref[...] - mean * scale
    h = _leaky_relu(h0 * scale + shift)         # (B,512); lanes 400..511 stay zero

    # --- fc[1]: Linear(400+A, 384-padded) on concat([h, actions]) ---
    # State part: single MXU pass.  Action part (K=A=4): unrolled VPU
    # outer-product FMAs instead of a second (nearly empty) MXU pass.
    z1 = (jnp.dot(h.astype(jnp.bfloat16), w1s_ref[...],
                  preferred_element_type=jnp.float32)
          + b1_ref[...])
    for k in range(a.shape[1]):                 # static unroll, action_size is tiny
        z1 = z1 + a[:, k:k + 1] * w1a_ref[k:k + 1, :]
    h1 = _leaky_relu(z1)

    # --- fc[2]: Linear(300, 1) padded to lane-dense N=128; real value in col 0 ---
    out_ref[...] = (jnp.dot(h1.astype(jnp.bfloat16), w2_ref[...],
                            preferred_element_type=jnp.float32)
                    + b2_ref[...])


def critic_forward(state, actions, params, out_size=1):
    B, input_size = state.shape
    action_size = actions.shape[1]
    vmem_spec = pl.BlockSpec(memory_space=pltpu.MemorySpace.VMEM)
    args = (state, actions,
            params["w0"], params["gamma"], params["beta"],
            params["w1_state"], params["w1_action"], params["b1"],
            params["w2"], params["b2"])

    flops = 2 * B * (input_size * HIDDEN_IN_PAD
                     + HIDDEN_IN_PAD * HIDDEN_OUT_PAD
                     + action_size * HIDDEN_OUT_PAD
                     + HIDDEN_OUT_PAD * OUT_PAD)
    bytes_accessed = int(sum(int(np.prod(a_.shape)) * a_.dtype.itemsize for a_ in args)
                         + B * OUT_PAD * 4)

    out_padded = pl.pallas_call(
        critic_kernel,
        out_shape=jax.ShapeDtypeStruct((B, OUT_PAD), jnp.float32),
        in_specs=[vmem_spec] * len(args),
        out_specs=vmem_spec,
        cost_estimate=pl.CostEstimate(flops=flops,
                                      transcendentals=HIDDEN_IN_PAD,  # the rsqrt lanes
                                      bytes_accessed=bytes_accessed),
    )(*args)
    return out_padded[:, :out_size]


def init_params(key, input_size, action_size, output_size=1):
    """Init mirroring the PyTorch module.

    Returns (kernel_params, ref_params):
      kernel_params: lane-aligned / bf16-packed arrays consumed by the kernel
                     (fc[0].bias intentionally absent — absorbed by BN).
      ref_params:    the original unpadded f32 parameters for the
                     PyTorch-semantics reference (including b0).
    """
    ks = jax.random.split(key, 6)
    # hidden_init uses weight.size(0) == out_features in the original code.
    lim0 = 1.0 / np.sqrt(HIDDEN_IN)
    lim1 = 1.0 / np.sqrt(HIDDEN_OUT)
    w0 = jax.random.uniform(ks[0], (input_size, HIDDEN_IN), jnp.float32, -lim0, lim0)
    b0 = jax.random.uniform(ks[1], (1, HIDDEN_IN), jnp.float32, -lim0, lim0)
    w1 = jax.random.uniform(ks[2], (HIDDEN_IN + action_size, HIDDEN_OUT),
                            jnp.float32, -lim1, lim1)
    b1 = jax.random.uniform(ks[3], (1, HIDDEN_OUT), jnp.float32, -lim1, lim1)
    w2 = jax.random.uniform(ks[4], (HIDDEN_OUT, output_size), jnp.float32, -3e-3, 3e-3)
    b2 = jax.random.uniform(ks[5], (1, output_size), jnp.float32, -3e-3, 3e-3)
    gamma = jnp.ones((1, HIDDEN_IN), jnp.float32)   # BatchNorm1d affine defaults
    beta = jnp.zeros((1, HIDDEN_IN), jnp.float32)

    ref_params = {"w0": w0, "b0": b0, "w1": w1, "b1": b1, "w2": w2, "b2": b2,
                  "gamma": gamma, "beta": beta}

    # --- lane-align padding (done once here, not per call) ---
    def pad_last(x, n):
        return jnp.pad(x, [(0, 0)] * (x.ndim - 1) + [(0, n - x.shape[-1])])

    w0_p = pad_last(w0, HIDDEN_IN_PAD)
    gamma_p = pad_last(gamma, HIDDEN_IN_PAD)   # zero padding (NOT ones)
    beta_p = pad_last(beta, HIDDEN_IN_PAD)

    w1s = jnp.pad(w1[:HIDDEN_IN],
                  [(0, HIDDEN_IN_PAD - HIDDEN_IN), (0, HIDDEN_OUT_PAD - HIDDEN_OUT)])
    w1a = pad_last(w1[HIDDEN_IN:], HIDDEN_OUT_PAD)   # (A, 384) — stays f32 (VPU FMAs)
    b1_p = pad_last(b1, HIDDEN_OUT_PAD)

    w2_p = jnp.pad(w2, [(0, HIDDEN_OUT_PAD - HIDDEN_OUT), (0, OUT_PAD - output_size)])
    b2_p = pad_last(b2, OUT_PAD)

    kernel_params = {
        # MXU weights in bf16 (half the DMA, MXU-native); biases/BN/action weights f32.
        "w0": w0_p.astype(jnp.bfloat16),
        "gamma": gamma_p, "beta": beta_p,
        "w1_state": w1s.astype(jnp.bfloat16),
        "w1_action": w1a,                 # f32: used by VPU FMAs, not the MXU
        "b1": b1_p,
        "w2": w2_p.astype(jnp.bfloat16), "b2": b2_p,
        # NOTE: fc[0].bias (b0) is intentionally NOT a kernel parameter — it is
        # exactly absorbed by the training-mode BatchNorm mean subtraction.
    }
    return kernel_params, ref_params


def critic_reference_f32(state, actions, p, out_size=1):
    """Pure f32 forward with the exact PyTorch semantics
    (Linear bias included, two-pass biased BatchNorm variance)."""
    h0 = state @ p["w0"] + p["b0"]
    mean = jnp.mean(h0, axis=0, keepdims=True)
    var = jnp.mean((h0 - mean) ** 2, axis=0, keepdims=True)
    hn = p["gamma"] * (h0 - mean) * jax.lax.rsqrt(var + BN_EPS) + p["beta"]
    h = jnp.where(hn >= 0, hn, NEG_SLOPE * hn)
    cat = jnp.concatenate([h, actions], axis=1)
    z1 = cat @ p["w1"] + p["b1"]
    h1 = jnp.where(z1 >= 0, z1, NEG_SLOPE * z1)
    return (h1 @ p["w2"] + p["b2"])[:, :out_size]


def critic_reference_kernel_numerics(state, actions, p, out_size=1):
    """Pure-JAX reference mirroring the kernel numerics (bf16 matmuls, fused BN)."""
    x = state.astype(jnp.bfloat16)
    h0 = jnp.dot(x, p["w0"], preferred_element_type=jnp.float32)
    mean = jnp.mean(h0, axis=0, keepdims=True)
    var = jnp.maximum(jnp.mean(h0 * h0, axis=0, keepdims=True) - mean * mean, 0.0)
    scale = p["gamma"] * jax.lax.rsqrt(var + BN_EPS)
    shift = p["beta"] - mean * scale
    hpre = h0 * scale + shift
    h = jnp.where(hpre >= 0, hpre, NEG_SLOPE * hpre)
    z1 = (jnp.dot(h.astype(jnp.bfloat16), p["w1_state"],
                  preferred_element_type=jnp.float32)
          + actions @ p["w1_action"] + p["b1"])
    h1 = jnp.where(z1 >= 0, z1, NEG_SLOPE * z1)
    out = jnp.dot(h1.astype(jnp.bfloat16), p["w2"],
                  preferred_element_type=jnp.float32) + p["b2"]
    return out[:, :out_size]


if __name__ == "__main__":
    key = jax.random.PRNGKey(0)
    k_state, k_action, k_param = jax.random.split(key, 3)

    batch, input_size, action_size = 8, 24, 4
    state = jax.random.normal(k_state, (batch, input_size), jnp.float32)
    actions = jax.random.normal(k_action, (batch, action_size), jnp.float32)
    kernel_params, ref_params = init_params(k_param, input_size, action_size,
                                            output_size=1)

    out = critic_forward(state, actions, kernel_params, out_size=1)
    out = jax.block_until_ready(out)
    assert out.shape == (batch, 1)

    # Tight check against a reference that mirrors the kernel numerics exactly.
    ref_kn = critic_reference_kernel_numerics(state, actions, kernel_params, out_size=1)
    np.testing.assert_allclose(np.asarray(out), np.asarray(ref_kn),
                               rtol=1e-3, atol=1e-3)

    # Loose check against the true f32 PyTorch-semantics forward (with fc[0].bias
    # and two-pass BN variance) — bf16 MXU operands bound the deviation.
    ref_f32 = critic_reference_f32(state, actions, ref_params, out_size=1)
    np.testing.assert_allclose(np.asarray(out), np.asarray(ref_f32),
                               rtol=1e-1, atol=1e-2)

    # TODO(synk): eval-mode BatchNorm (running mean/var tracking) is not modeled;
    # the kernel reproduces training-mode batch statistics like the PyTorch forward.
    print("KERNEL_OK")
</pallas_src>

<mosaic_0001>
module attributes {stable_mosaic.version = 11 : i64} {
  func.func @critic_kernel(%arg0: memref<8x24xf32, #tpu.memory_space<vmem>>, %arg1: memref<8x4xf32, #tpu.memory_space<vmem>>, %arg2: memref<24x512xbf16, #tpu.memory_space<vmem>>, %arg3: memref<1x512xf32, #tpu.memory_space<vmem>>, %arg4: memref<1x512xf32, #tpu.memory_space<vmem>>, %arg5: memref<512x384xbf16, #tpu.memory_space<vmem>>, %arg6: memref<4x384xf32, #tpu.memory_space<vmem>>, %arg7: memref<1x384xf32, #tpu.memory_space<vmem>>, %arg8: memref<384x128xbf16, #tpu.memory_space<vmem>>, %arg9: memref<1x128xf32, #tpu.memory_space<vmem>>, %arg10: memref<8x128xf32, #tpu.memory_space<vmem>>) attributes {dimension_semantics = [], scalar_prefetch = 0 : i64, scratch_operands = 0 : i64, tpu.core_type = #tpu.core_type<tc>} {
    %c0 = arith.constant 0 : index
    %c0_0 = arith.constant 0 : index
    %0 = vector.load %arg0[%c0, %c0_0] : memref<8x24xf32, #tpu.memory_space<vmem>>, vector<8x24xf32>
    %1 = arith.truncf %0 : vector<8x24xf32> to vector<8x24xbf16>
    %c0_1 = arith.constant 0 : index
    %c0_2 = arith.constant 0 : index
    %2 = vector.load %arg1[%c0_1, %c0_2] : memref<8x4xf32, #tpu.memory_space<vmem>>, vector<8x4xf32>
    %c0_3 = arith.constant 0 : index
    %c0_4 = arith.constant 0 : index
    %3 = vector.load %arg2[%c0_3, %c0_4] : memref<24x512xbf16, #tpu.memory_space<vmem>>, vector<24x512xbf16>
    %cst = arith.constant dense<0.000000e+00> : vector<8x512xf32>
    %4 = tpu.matmul %1, %3, %cst {dimension_numbers = #tpu.dot_dimension_numbers<[1], [0], [0], [1], [0, 0, 1, 1], [], []>} : vector<8x24xbf16>, vector<24x512xbf16>, vector<8x512xf32> -> vector<8x512xf32>
    %cst_5 = arith.constant dense<0.000000e+00> : vector<512xf32>
    %5 = vector.multi_reduction <add>, %4, %cst_5 [0] : vector<8x512xf32> to vector<512xf32>
    %6 = vector.shape_cast %5 : vector<512xf32> to vector<1x512xf32>
    %cst_6 = arith.constant 1.250000e-01 : f32
    %7 = vector.broadcast %cst_6 : f32 to vector<1x512xf32>
    %8 = arith.mulf %6, %7 : vector<1x512xf32>
    %9 = arith.mulf %4, %4 : vector<8x512xf32>
    %cst_7 = arith.constant dense<0.000000e+00> : vector<512xf32>
    %10 = vector.multi_reduction <add>, %9, %cst_7 [0] : vector<8x512xf32> to vector<512xf32>
    %11 = vector.shape_cast %10 : vector<512xf32> to vector<1x512xf32>
    %cst_8 = arith.constant 1.250000e-01 : f32
    %12 = vector.broadcast %cst_8 : f32 to vector<1x512xf32>
    %13 = arith.mulf %11, %12 : vector<1x512xf32>
    %14 = arith.mulf %8, %8 : vector<1x512xf32>
    %15 = arith.subf %13, %14 : vector<1x512xf32>
    %cst_9 = arith.constant 0.000000e+00 : f32
    %16 = vector.broadcast %cst_9 : f32 to vector<1x512xf32>
    %17 = arith.maximumf %15, %16 : vector<1x512xf32>
    %c0_10 = arith.constant 0 : index
    %c0_11 = arith.constant 0 : index
    %18 = vector.load %arg3[%c0_10, %c0_11] : memref<1x512xf32, #tpu.memory_space<vmem>>, vector<1x512xf32>
    %cst_12 = arith.constant 9.99999974E-6 : f32
    %19 = vector.broadcast %cst_12 : f32 to vector<1x512xf32>
    %20 = arith.addf %17, %19 : vector<1x512xf32>
    %21 = math.rsqrt %20 : vector<1x512xf32>
    %22 = arith.mulf %18, %21 : vector<1x512xf32>
    %c0_13 = arith.constant 0 : index
    %c0_14 = arith.constant 0 : index
    %23 = vector.load %arg4[%c0_13, %c0_14] : memref<1x512xf32, #tpu.memory_space<vmem>>, vector<1x512xf32>
    %24 = arith.mulf %8, %22 : vector<1x512xf32>
    %25 = arith.subf %23, %24 : vector<1x512xf32>
    %26 = vector.broadcast %22 : vector<1x512xf32> to vector<8x512xf32>
    %27 = arith.mulf %4, %26 : vector<8x512xf32>
    %28 = vector.broadcast %25 : vector<1x512xf32> to vector<8x512xf32>
    %29 = arith.addf %27, %28 : vector<8x512xf32>
    %cst_15 = arith.constant 0.000000e+00 : f32
    %30 = vector.broadcast %cst_15 : f32 to vector<8x512xf32>
    %31 = arith.cmpf oge, %29, %30 : vector<8x512xf32>
    %cst_16 = arith.constant 0.00999999977 : f32
    %32 = vector.broadcast %cst_16 : f32 to vector<8x512xf32>
    %33 = arith.mulf %32, %29 : vector<8x512xf32>
    %34 = arith.select %31, %29, %33 : vector<8x512xi1>, vector<8x512xf32>
    %35 = arith.truncf %34 : vector<8x512xf32> to vector<8x512xbf16>
    %c0_17 = arith.constant 0 : index
    %c0_18 = arith.constant 0 : index
    %36 = vector.load %arg5[%c0_17, %c0_18] : memref<512x384xbf16, #tpu.memory_space<vmem>>, vector<512x384xbf16>
    %cst_19 = arith.constant dense<0.000000e+00> : vector<8x384xf32>
    %37 = tpu.matmul %35, %36, %cst_19 {dimension_numbers = #tpu.dot_dimension_numbers<[1], [0], [0], [1], [0, 0, 1, 1], [], []>} : vector<8x512xbf16>, vector<512x384xbf16>, vector<8x384xf32> -> vector<8x384xf32>
    %c0_20 = arith.constant 0 : index
    %c0_21 = arith.constant 0 : index
    %38 = vector.load %arg7[%c0_20, %c0_21] : memref<1x384xf32, #tpu.memory_space<vmem>>, vector<1x384xf32>
    %39 = vector.broadcast %38 : vector<1x384xf32> to vector<8x384xf32>
    %40 = arith.addf %37, %39 : vector<8x384xf32>
    %41 = vector.extract_strided_slice %2 {offsets = [0, 0], sizes = [8, 1], strides = [1, 1]} : vector<8x4xf32> to vector<8x1xf32>
    %c0_22 = arith.constant 0 : index
    %c0_23 = arith.constant 0 : index
    %42 = vector.load %arg6[%c0_22, %c0_23] : memref<4x384xf32, #tpu.memory_space<vmem>>, vector<1x384xf32>
    %43 = vector.broadcast %41 : vector<8x1xf32> to vector<8x384xf32>
    %44 = vector.broadcast %42 : vector<1x384xf32> to vector<8x384xf32>
    %45 = arith.mulf %43, %44 : vector<8x384xf32>
    %46 = arith.addf %40, %45 : vector<8x384xf32>
    %47 = vector.extract_strided_slice %2 {offsets = [0, 1], sizes = [8, 1], strides = [1, 1]} : vector<8x4xf32> to vector<8x1xf32>
    %c1 = arith.constant 1 : index
    %c0_24 = arith.constant 0 : index
    %48 = vector.load %arg6[%c1, %c0_24] : memref<4x384xf32, #tpu.memory_space<vmem>>, vector<1x384xf32>
    %49 = vector.broadcast %47 : vector<8x1xf32> to vector<8x384xf32>
    %50 = vector.broadcast %48 : vector<1x384xf32> to vector<8x384xf32>
    %51 = arith.mulf %49, %50 : vector<8x384xf32>
    %52 = arith.addf %46, %51 : vector<8x384xf32>
    %53 = vector.extract_strided_slice %2 {offsets = [0, 2], sizes = [8, 1], strides = [1, 1]} : vector<8x4xf32> to vector<8x1xf32>
    %c2 = arith.constant 2 : index
    %c0_25 = arith.constant 0 : index
    %54 = vector.load %arg6[%c2, %c0_25] : memref<4x384xf32, #tpu.memory_space<vmem>>, vector<1x384xf32>
    %55 = vector.broadcast %53 : vector<8x1xf32> to vector<8x384xf32>
    %56 = vector.broadcast %54 : vector<1x384xf32> to vector<8x384xf32>
    %57 = arith.mulf %55, %56 : vector<8x384xf32>
    %58 = arith.addf %52, %57 : vector<8x384xf32>
    %59 = vector.extract_strided_slice %2 {offsets = [0, 3], sizes = [8, 1], strides = [1, 1]} : vector<8x4xf32> to vector<8x1xf32>
    %c3 = arith.constant 3 : index
    %c0_26 = arith.constant 0 : index
    %60 = vector.load %arg6[%c3, %c0_26] : memref<4x384xf32, #tpu.memory_space<vmem>>, vector<1x384xf32>
    %61 = vector.broadcast %59 : vector<8x1xf32> to vector<8x384xf32>
    %62 = vector.broadcast %60 : vector<1x384xf32> to vector<8x384xf32>
    %63 = arith.mulf %61, %62 : vector<8x384xf32>
    %64 = arith.addf %58, %63 : vector<8x384xf32>
    %cst_27 = arith.constant 0.000000e+00 : f32
    %65 = vector.broadcast %cst_27 : f32 to vector<8x384xf32>
    %66 = arith.cmpf oge, %64, %65 : vector<8x384xf32>
    %cst_28 = arith.constant 0.00999999977 : f32
    %67 = vector.broadcast %cst_28 : f32 to vector<8x384xf32>
    %68 = arith.mulf %67, %64 : vector<8x384xf32>
    %69 = arith.select %66, %64, %68 : vector<8x384xi1>, vector<8x384xf32>
    %70 = arith.truncf %69 : vector<8x384xf32> to vector<8x384xbf16>
    %c0_29 = arith.constant 0 : index
    %c0_30 = arith.constant 0 : index
    %71 = vector.load %arg8[%c0_29, %c0_30] : memref<384x128xbf16, #tpu.memory_space<vmem>>, vector<384x128xbf16>
    %cst_31 = arith.constant dense<0.000000e+00> : vector<8x128xf32>
    %72 = tpu.matmul %70, %71, %cst_31 {dimension_numbers = #tpu.dot_dimension_numbers<[1], [0], [0], [1], [0, 0, 1, 1], [], []>} : vector<8x384xbf16>, vector<384x128xbf16>, vector<8x128xf32> -> vector<8x128xf32>
    %c0_32 = arith.constant 0 : index
    %c0_33 = arith.constant 0 : index
    %73 = vector.load %arg9[%c0_32, %c0_33] : memref<1x128xf32, #tpu.memory_space<vmem>>, vector<1x128xf32>
    %74 = vector.broadcast %73 : vector<1x128xf32> to vector<8x128xf32>
    %75 = arith.addf %72, %74 : vector<8x128xf32>
    %c0_34 = arith.constant 0 : index
    %c0_35 = arith.constant 0 : index
    %76 = vector.load %arg10[%c0_34, %c0_35] : memref<8x128xf32, #tpu.memory_space<vmem>>, vector<8x128xf32>
    tpu.vector_store %arg10[%c0_34, %c0_35], %75 {strides = array<i32>} : memref<8x128xf32, #tpu.memory_space<vmem>>, vector<8x128xf32>,
    return
  }
}

</mosaic_0001>

<bundles_post_ra>
// kernel: tpu_custom_call.1
= control target key start
LH: loop header
LB: loop body
LE: loop exit
PB: predicated region body
PF: predicated region fallthrough
CT: control target
= control target key end

     0   :  { %15 = vsyncpa [#allocation3], 0  ;;  %s2719_s0 = inlined_call_operand.hbm [shape: f32[8,24], index: 0, kind: input, shape index: {}]   ;;  %s2720_s1 = inlined_call_operand.vmem [shape: f32[8,4], index: 1, kind: input, shape index: {}]   ;;  %s2721_s2 = inlined_call_operand.hbm [shape: bf16[24,512], index: 2, kind: input, shape index: {}]   ;;  %s2722_s3 = inlined_call_operand.vmem [shape: f32[1,512], index: 3, kind: input, shape index: {}]   ;;  %s2723_s4 = inlined_call_operand.hbm [shape: f32[1,512], index: 4, kind: input, shape index: {}]   ;;  %s2724_s5 = inlined_call_operand.hbm [shape: bf16[512,384], index: 5, kind: input, shape index: {}]   ;;  %s2725_s6 = inlined_call_operand.vmem [shape: f32[4,384], index: 6, kind: input, shape index: {}]   ;;  %s2726_s7 = inlined_call_operand.hbm [shape: f32[1,384], index: 7, kind: input, shape index: {}]   ;;  %s2727_s8 = inlined_call_operand.hbm [shape: bf16[384,128], index: 8, kind: input, shape index: {}]   ;;  %s2728_s9 = inlined_call_operand.vmem [shape: f32[1,128], index: 9, kind: input, shape index: {}]   ;;  %s2729_s10 = inlined_call_operand.hbm [shape: f32[8,128], index: 10, kind: output, shape index: {}]  }
   0x1   :  { %16 = vsyncpa [#allocation6], 0 }
   0x2   :  { %17 = vsyncpa [#allocation9], 0 }
   0x3   :  { %18 = vsyncpa [#allocation12], 0  ;;  %s37_s15 = sshll.u32 %s2721_s2, 4  ;;  %s38_s15 = int_to_ptr.hbm [resolvable:$true] %s37_s15 }
   0x4   :  { %19 = vsyncpa [#allocation4], 0  ;;  %s2408_s16 = smov [#allocation5]   ;;  %s63_s20 = sshll.u32 %s2724_s5, 4  ;;  %s64_s20 = int_to_ptr.hbm [resolvable:$true] %s63_s20 }
   0x5   :  { %s39_s17 = sshll.u32 %s2408_s16, 4  ;;  %s2409_s21 = smov 256   ;;  %s40_s17 = int_to_ptr.vmem [resolvable:$true] %s39_s17 }
   0x6   :  { %s2410_s22 = smov 16   ;;  %s2411_s23 = smov [#allocation8]  }
   0x7   :  { %45 = dma.hbm_to_vmem [thread:$0]  %s38_s15, 768, %s40_s17, [#allocation6], %s2409_s21, %s2409_s21, %s2410_s22  }
   0x8   :  { %s65_s24 = sshll.u32 %s2411_s23, 4  ;;  %s2412_s25 = smov 192   ;;  %s66_s24 = int_to_ptr.vmem [resolvable:$true] %s65_s24 }
   0x9   :  { %s2413_s26 = smov 12   ;;  %s25_s28 = sshll.u32 %s2719_s0, 4  ;;  %s26_s28 = int_to_ptr.hbm [resolvable:$true] %s25_s28 }
   0xa   :  { %71 = dma.hbm_to_vmem [thread:$0]  %s64_s20, 12288, %s66_s24, [#allocation9], %s2412_s25, %s2412_s25, %s2413_s26  }
   0xb   :  { %s2414_s29 = smov [#allocation2]   ;;  %s53_s12 = sshll.u32 %s2723_s4, 4  ;;  %s54_s12 = int_to_ptr.hbm [resolvable:$true] %s53_s12 }
   0xc   :  { %s27_s30 = sshll.u32 %s2414_s29, 4  ;;  %s2415_s13 = smov [#allocation7]   ;;  %s28_s30 = int_to_ptr.vmem [resolvable:$true] %s27_s30 }
   0xd   :  { %30 = dma.hbm_to_vmem [thread:$0]  %s26_s28, 128, %s28_s30, [#allocation3]  }
   0xe   :  { %s55_s14 = sshll.u32 %s2415_s13, 4  ;;  %s79_s17 = sshll.u32 %s2726_s7, 4  ;;  %s56_s14 = int_to_ptr.vmem [resolvable:$true] %s55_s14  ;;  %s80_s17 = int_to_ptr.hbm [resolvable:$true] %s79_s17 }
   0xf   :  { %58 = dma.hbm_to_vmem [thread:$0]  %s54_s12, 64, %s56_s14, [#allocation6]  }
  0x10   :  { %s89_s19 = sshll.u32 %s2727_s8, 4  ;;  %s2416_s20 = smov [#allocation10]   ;;  %s90_s19 = int_to_ptr.hbm [resolvable:$true] %s89_s19 }
  0x11   :  { %s81_s21 = sshll.u32 %s2416_s20, 4  ;;  %s2417_s4 = smov [#allocation11]   ;;  %s82_s21 = int_to_ptr.vmem [resolvable:$true] %s81_s21 }
  0x12   :  { %84 = dma.hbm_to_vmem [thread:$0]  %s80_s17, 48, %s82_s21, [#allocation9]  }
  0x13   :  { %s91_s22 = sshll.u32 %s2417_s4, 4  ;;  %s2418_s23 = smov 64   ;;  %s92_s22 = int_to_ptr.vmem [resolvable:$true] %s91_s22 }
  0x14   :  { %s2419_s24 = smov 4  }
  0x15   :  { %97 = dma.hbm_to_vmem [thread:$0]  %s90_s19, 3072, %s92_s22, [#allocation12], %s2418_s23, %s2418_s23, %s2419_s24  }
  0x16   :  { %2398 = dma.done.wait [#allocation3], 128  }
  0x17   :  { %2399 = vsyncadd [#allocation3], 4294967168 }
  0x18   :  { %2400 = dma.done.wait [#allocation6], 832  }
  0x19   :  { %2401 = vsyncadd [#allocation6], 4294966464 }
  0x1a   :  { %2402 = dma.done.wait [#allocation9], 12336  }
  0x1b   :  { %2403 = vsyncadd [#allocation9], 4294954960 }
  0x1c   :  { %2404 = dma.done.wait [#allocation12], 3072  }
  0x1d   :  { %2405 = vsyncadd [#allocation12], 4294964224  ;;  %v132_v0 = vld [vmem:[#allocation5 + $0x20] sm:$0xff]  ;;  %v133_v1 = vld [vmem:[#allocation5 + $0x28] sm:$0xff]  ;;  %vm168_vm0 = vcmask 1043456   ;;  %vm164_vm1 = vcmask 195584  }
  0x1e   :  { %v148_v2 = vunpack.c.l.b16 %v132_v0  ;;  %v150_v3 = vunpack.c.l.b16 %v133_v1  ;;  %v149_v4 = vunpack.c.h.b16 %v132_v0  ;;  %v151_v5 = vunpack.c.h.b16 %v133_v1  ;;  %v1574_v6 = vld [vmem:[#allocation5] sm:$0xf]  ;;  %v2077_v7 = vld [vmem:[#allocation5 + $0xc] sm:$0xf0]  ;;  %v1582_v11 = vld [vmem:[#allocation5 + $0x8] sm:$0xf] }
  0x1f   :  { %v2078_v12 = vld [vmem:[#allocation5 + $0x14] sm:$0xf0]  ;;  %v2075_v13 = vld [vmem:[#allocation5 + $0x4] sm:$0xf]  ;;  %v1576_v14 = vld [vmem:[#allocation5 + $0x10] sm:$0xf0]  ;;  %v1575_v19 = vor.u32 %v2077_v7, %v1574_v6 }
  0x20   :  { %v156_v8 = vpack.c.b16 %v148_v2, %v148_v2  ;;  %v158_v9 = vpack.c.b16 %v150_v3, %v150_v3  ;;  %v157_v10 = vpack.c.b16 %v149_v4, %v149_v4  ;;  %v159_v15 = vpack.c.b16 %v151_v5, %v151_v5  ;;  %v125_v21 = vld [vmem:[#allocation2] sm:$0xff]  ;;  %v2076_v24 = vld [vmem:[#allocation5 + $0xc] sm:$0xf]  ;;  %v2101_v29 = vld [vmem:[#allocation8 + $0xb0] sm:$0xf0]  ;;  %s2424_s12 = smov [#allocation13]  }
  0x21   :  { %v1583_v20 = vor.u32 %v2078_v12, %v1582_v11  ;;  %v1579_v22 = vor.u32 %v2075_v13, %v1576_v14  ;;  %v1584_v25 = vld [vmem:[#allocation5 + $0x18] sm:$0xf0]  ;;  %v126_v26 = vpack.c.bf16 %v125_v21, %v125_v21  ;;  %v2125_v32 = vld [vmem:[#allocation8 + $0x170] sm:$0xf0]  ;;  %v1666_v43 = vld [vmem:[#allocation8 + $0x90] sm:$0xf] }
  0x22   :  { %v170_v16 = vsel %vm168_vm0, %v156_v8, 0  ;;  %v176_v17 = vsel %vm168_vm0, %v158_v9, 0  ;;  %v173_v18 = vsel %vm168_vm0, %v157_v10, 0  ;;  %v179_v23 = vsel %vm168_vm0, %v159_v15, 0  ;;  %v1678_v28 = vld [vmem:[#allocation8 + $0xa8] sm:$0xf] }
  0x23   :  { %187 = vmatpush.bf16.msra.mxu3 %v170_v16  ;;  %213 = vmatpush.bf16.msra.mxu2 %v176_v17  ;;  %v1587_v27 = vor.u32 %v2076_v24, %v1584_v25  ;;  %v1774_v30 = vld [vmem:[#allocation8 + $0x168] sm:$0xf]  ;;  %v1679_v31 = vor.u32 %v2101_v29, %v1678_v28  ;;  %v2149_v34 = vld [vmem:[#allocation8 + $0x230] sm:$0xf0]  ;;  %v2098_v44 = vld [vmem:[#allocation8 + $0x98] sm:$0xf0] }
  0x24   :  { %200 = vmatpush.bf16.msra.mxu1 %v173_v18  ;;  %v1870_v33 = vld [vmem:[#allocation8 + $0x228] sm:$0xf]  ;;  %v1775_v35 = vor.u32 %v2125_v32, %v1774_v30  ;;  %v2173_v38 = vld [vmem:[#allocation8 + $0x2f0] sm:$0xf0]  ;;  %v1667_v45 = vor.u32 %v2098_v44, %v1666_v43  ;;  %v1762_v46 = vld [vmem:[#allocation8 + $0x150] sm:$0xf] }
  0x25   :  { %v1871_v36 = vor.u32 %v2149_v34, %v1870_v33  ;;  %v1966_v37 = vld [vmem:[#allocation8 + $0x2e8] sm:$0xf]  ;;  %1072 = vmatpush.bf16.msra.mxu0 %v1679_v31  ;;  %v2122_v47 = vld [vmem:[#allocation8 + $0x158] sm:$0xf0]  ;;  %v1858_v48 = vld [vmem:[#allocation8 + $0x210] sm:$0xf] }
  0x26   :  { %v1967_v40 = vor.u32 %v2173_v38, %v1966_v37  ;;  %v1763_v51 = vor.u32 %v2122_v47, %v1762_v46  ;;  %v2146_v52 = vld [vmem:[#allocation8 + $0x218] sm:$0xf0]  ;;  %v1954_v53 = vld [vmem:[#allocation8 + $0x2d0] sm:$0xf]  ;;  %v1654_v61 = vld [vmem:[#allocation8 + $0x78] sm:$0xf] }
  0x27   :  { %188 = vmatpush.bf16.msra.mxu3 %v1575_v19  ;;  %214 = vmatpush.bf16.msra.mxu2 %v1583_v20  ;;  %v1859_v54 = vor.u32 %v2146_v52, %v1858_v48  ;;  %v2170_v55 = vld [vmem:[#allocation8 + $0x2d8] sm:$0xf0]  ;;  %v2095_v62 = vld [vmem:[#allocation8 + $0x80] sm:$0xf0]  ;;  %v1750_v3 = vld [vmem:[#allocation8 + $0x138] sm:$0xf] }
  0x28   :  { %201 = vmatpush.bf16.msra.mxu1 %v1579_v22  ;;  %v1955_v60 = vor.u32 %v2170_v55, %v1954_v53  ;;  %v2119_v4 = vld [vmem:[#allocation8 + $0x140] sm:$0xf0]  ;;  %v1655_v7 = vor.u32 %v2095_v62, %v1654_v61  ;;  %v1846_v9 = vld [vmem:[#allocation8 + $0x1f8] sm:$0xf]  ;;  %v1642_v22 = vld [vmem:[#allocation8 + $0x60] sm:$0xf] }
  0x29   :  { %1073 = vmatpush.bf16.msra.mxu0 %v1667_v45  ;;  %v1751_v8 = vor.u32 %v2119_v4, %v1750_v3  ;;  %v2143_v10 = vld [vmem:[#allocation8 + $0x200] sm:$0xf0]  ;;  %v1942_v16 = vld [vmem:[#allocation8 + $0x2b8] sm:$0xf]  ;;  %v1738_v28 = vld [vmem:[#allocation8 + $0x120] sm:$0xf] }
  0x2a   :  { %1588 = vmatmul.msk.bf16.vlgmr.msra.gmra.mxu3 %vm164_vm1, %v126_v26  ;;  %1590 = vmatmul.msk.bf16.vlgmr.msra.gmra.mxu2 %vm164_vm1, %v126_v26  ;;  %v2167_v17 = vld [vmem:[#allocation8 + $0x2c0] sm:$0xf0]  ;;  %v1847_v20 = vor.u32 %v2143_v10, %v1846_v9  ;;  %v2116_v29 = vld [vmem:[#allocation8 + $0x128] sm:$0xf0]  ;;  %v1834_v34 = vld [vmem:[#allocation8 + $0x1e0] sm:$0xf] }
  0x2b   :  { %226 = vmatpush.bf16.msrb.mxu3 %v179_v23  ;;  %1589 = vmatmul.msk.bf16.vlgmr.msra.gmra.mxu1 %vm164_vm1, %v126_v26  ;;  %v1943_v21 = vor.u32 %v2167_v17, %v1942_v16  ;;  %v2092_v23 = vld [vmem:[#allocation8 + $0x68] sm:$0xf0]  ;;  %v1739_v33 = vor.u32 %v2116_v29, %v1738_v28  ;;  %v1726_v55 = vld [vmem:[#allocation8 + $0x108] sm:$0xf]  ;;  %v2137_v3 = vld [vmem:[#allocation8 + $0x1d0] sm:$0xf0] }
  0x2c   :  { %1085 = vmatpush.bf16.msrb.mxu1 %v1775_v35  ;;  %1098 = vmatpush.bf16.msrb.mxu2 %v1871_v36  ;;  %v1643_v32 = vor.u32 %v2092_v23, %v1642_v22  ;;  %v2140_v35 = vld [vmem:[#allocation8 + $0x1e8] sm:$0xf0]  ;;  %v1822_v62 = vld [vmem:[#allocation8 + $0x1c8] sm:$0xf]  ;;  %v1618_v9 = vld [vmem:[#allocation8 + $0x30] sm:$0xf] }
  0x2d   :  { %1074 = vmatpush.bf16.msra.mxu0 %v1655_v7  ;;  %v1835_v47 = vor.u32 %v2140_v35, %v1834_v34  ;;  %v1918_v4 = vld [vmem:[#allocation8 + $0x288] sm:$0xf]  ;;  %v1823_v7 = vor.u32 %v2137_v3, %v1822_v62  ;;  %v2086_v10 = vld [vmem:[#allocation8 + $0x38] sm:$0xf0]  ;;  %v2083_v34 = vld [vmem:[#allocation8 + $0x20] sm:$0xf0] }
  0x2e   :  { %v2110_v16 = vld [vmem:[#allocation8 + $0xf8] sm:$0xf0]  ;;  %v2128_v3 = vld [vmem:[#allocation8 + $0x188] sm:$0xf0]  ;;  %vm357_vm14 = vcmask 1040384   ;;  %vm359_vm15 = vcmask 1042434  }
  0x2f   :  { %227 = vmatpush.bf16.msrb.mxu3 %v1587_v27  ;;  %v2134_v22 = vld [vmem:[#allocation8 + $0x1b8] sm:$0xf0]  ;;  %vm361_vm0 = vcmask 1041408   ;;  %s1557_s13 = sshll.u32 %s2424_s12, 4  ;;  %s1559_s16 = sshll.u32 %s2729_s10, 4  ;;  %s1558_s13 = int_to_ptr.vmem [resolvable:$true] %s1557_s13  ;;  %s1560_s16 = int_to_ptr.hbm [resolvable:$true] %s1559_s16 }
  0x30   :  { %1086 = vmatpush.bf16.msrb.mxu1 %v1763_v51  ;;  %1099 = vmatpush.bf16.msrb.mxu2 %v1859_v54  ;;  %v2158_v28 = vld [vmem:[#allocation8 + $0x278] sm:$0xf0] }
  0x31   :  { %1075 = vmatpush.bf16.msra.mxu0 %v1643_v32 }
  0x33   :  { %1111 = vmatpush.bf16.msra.mxu3 %v1967_v40 }
  0x34   :  { %1087 = vmatpush.bf16.msrb.mxu1 %v1751_v8  ;;  %1100 = vmatpush.bf16.msrb.mxu2 %v1847_v20  ;;  %v2161_v8 = vld [vmem:[#allocation8 + $0x290] sm:$0xf0] }
  0x37   :  { %1112 = vmatpush.bf16.msra.mxu3 %v1955_v60 }
  0x38   :  { %1088 = vmatpush.bf16.msrb.mxu1 %v1739_v33  ;;  %1101 = vmatpush.bf16.msrb.mxu2 %v1835_v47  ;;  %v1606_v33 = vld [vmem:[#allocation8 + $0x18] sm:$0xf] }
  0x39   :  { %v1894_v47 = vld [vmem:[#allocation8 + $0x258] sm:$0xf] }
  0x3a   :  { %1591 = vmatmul.msk.bf16.vlgmr.msrb.gmra.mxu3 %vm164_vm1, %v126_v26 }
  0x3b   :  { %1113 = vmatpush.bf16.msra.mxu3 %v1943_v21  ;;  %v1810_v21 = vld [vmem:[#allocation8 + $0x1b0] sm:$0xf] }
  0x3c   :  { %1102 = vmatpush.bf16.msrb.mxu2 %v1823_v7  ;;  %v2100_v7 = vld [vmem:[#allocation8 + $0xac] sm:$0xf] }
  0xa8   :  { %v2502_v39 = vpop.f32.mrf.mxu1 }
  0xa9   :  { %v239_v41 = vrot.slane %v2502_v39, 4  ;;  %v262_v42 = vmul.f32 %v2502_v39, %v2502_v39 }
  0xab   :  { %v240_v49 = vadd.f32 %v239_v41, %v2502_v39  ;;  %v271_v50 = vrot.slane %v262_v42, 4  ;;  %v1930_v41 = vld [vmem:[#allocation8 + $0x2a0] sm:$0xf] }
  0xad   :  { %v241_v56 = vrot.slane %v240_v49, 2  ;;  %v272_v57 = vadd.f32 %v271_v50, %v262_v42  ;;  %v2508_v58 = vpop.f32.mrf.mxu3  ;;  %v2510_v59 = vpop.f32.mrf.mxu2  ;;  %v2164_v42 = vld [vmem:[#allocation8 + $0x2a8] sm:$0xf0]  ;;  %v2089_v50 = vld [vmem:[#allocation8 + $0x50] sm:$0xf0] }
  0xae   :  { %v233_v63 = vrot.slane %v2508_v58, 4  ;;  %v261_v0 = vmul.f32 %v2508_v58, %v2508_v58  ;;  %v245_v1 = vrot.slane %v2510_v59, 4  ;;  %v263_v2 = vmul.f32 %v2510_v59, %v2510_v59 }
  0xaf   :  { %v242_v5 = vadd.f32 %v241_v56, %v240_v49  ;;  %v273_v6 = vrot.slane %v272_v57, 2  ;;  %v1931_v48 = vor.u32 %v2164_v42, %v1930_v41  ;;  %v1630_v49 = vld [vmem:[#allocation8 + $0x48] sm:$0xf]  ;;  %v2113_v56 = vld [vmem:[#allocation8 + $0x110] sm:$0xf0]  ;;  %v1607_v42 = vor.u32 %v2083_v34, %v1606_v33 }
  0xb0   :  { %v234_v11 = vadd.f32 %v233_v63, %v2508_v58  ;;  %v265_v12 = vrot.slane %v261_v0, 4  ;;  %v246_v13 = vadd.f32 %v245_v1, %v2510_v59  ;;  %v277_v14 = vrot.slane %v263_v2, 4  ;;  %v205_v15 = vpop.f32.mrf.mxu1  ;;  %v2107_v41 = vld [vmem:[#allocation8 + $0xe0] sm:$0xf0] }
  0xb1   :  { %v243_v18 = vrot.slane %v242_v5, 1  ;;  %v274_v19 = vadd.f32 %v273_v6, %v272_v57  ;;  %1114 = vmatpush.bf16.msra.mxu3 %v1931_v48  ;;  %v1631_v61 = vor.u32 %v2089_v50, %v1630_v49  ;;  %v1727_v6 = vor.u32 %v2113_v56, %v1726_v55  ;;  %v1714_v15 = vld [vmem:[#allocation8 + $0xf0] sm:$0xf]  ;;  %v1594_v55 = vld [vmem:[#allocation8] sm:$0xf] }
  0xb2   :  { %v235_v24 = vrot.slane %v234_v11, 2  ;;  %v266_v25 = vadd.f32 %v265_v12, %v261_v0  ;;  %v247_v26 = vrot.slane %v246_v13, 2  ;;  %v278_v27 = vadd.f32 %v277_v14, %v263_v2  ;;  %v2080_v56 = vld [vmem:[#allocation8 + $0x8] sm:$0xf0] }
  0xb3   :  { %v244_v30 = vadd.f32 %v243_v18, %v242_v5  ;;  %v275_v31 = vrot.slane %v274_v19, 1  ;;  %1076 = vmatpush.bf16.msra.mxu0 %v1631_v61  ;;  %1089 = vmatpush.bf16.msrb.mxu1 %v1727_v6  ;;  %v1919_v18 = vor.u32 %v2161_v8, %v1918_v4  ;;  %v1715_v20 = vor.u32 %v2110_v16, %v1714_v15  ;;  %v2152_v6 = vld [vmem:[#allocation8 + $0x248] sm:$0xf0] }
  0xb4   :  { %v236_v36 = vadd.f32 %v235_v24, %v234_v11  ;;  %v267_v37 = vrot.slane %v266_v25, 2  ;;  %v248_v38 = vadd.f32 %v247_v26, %v246_v13  ;;  %v279_v40 = vrot.slane %v278_v27, 2  ;;  %v2124_v15 = vld [vmem:[#allocation8 + $0x16c] sm:$0xf] }
  0xb5   :  { %v2520_v43 = vmul.f32 0.125, %v244_v30  ;;  %v276_v44 = vadd.f32 %v275_v31, %v274_v19  ;;  %v192_v45 = vpop.f32.mrf.mxu3  ;;  %v218_v46 = vpop.f32.mrf.mxu2  ;;  %v1619_v19 = vor.u32 %v2086_v10, %v1618_v9  ;;  %1115 = vmatpush.bf16.msra.mxu3 %v1919_v18  ;;  %v1811_v31 = vor.u32 %v2134_v22, %v1810_v21  ;;  %v1776_v18 = vld [vmem:[#allocation8 + $0x174] sm:$0xf0] }
  0xb6   :  { %v237_v51 = vrot.slane %v236_v36, 1  ;;  %v268_v52 = vadd.f32 %v267_v37, %v266_v25  ;;  %v249_v53 = vrot.slane %v248_v38, 1  ;;  %v280_v54 = vadd.f32 %v279_v40, %v278_v27  ;;  %v1906_v27 = vld [vmem:[#allocation8 + $0x270] sm:$0xf]  ;;  %v1702_v40 = vld [vmem:[#allocation8 + $0xd8] sm:$0xf] }
  0xb7   :  { %v290_v57 = vmul.f32 0.125, %v276_v44  ;;  %v294_v60 = vmul.f32 %v2520_v43, %v2520_v43  ;;  %1077 = vmatpush.bf16.msra.mxu0 %v1619_v19  ;;  %v1907_v32 = vor.u32 %v2158_v28, %v1906_v27  ;;  %1090 = vmatpush.bf16.msrb.mxu1 %v1715_v20  ;;  %v1703_v44 = vor.u32 %v2107_v41, %v1702_v40  ;;  %v1798_v45 = vld [vmem:[#allocation8 + $0x198] sm:$0xf]  ;;  %v2131_v46 = vld [vmem:[#allocation8 + $0x1a0] sm:$0xf0] }
  0xb8   :  { %v238_v63 = vadd.f32 %v237_v51, %v236_v36  ;;  %v269_v0 = vrot.slane %v268_v52, 1  ;;  %v250_v1 = vadd.f32 %v249_v53, %v248_v38  ;;  %v281_v2 = vrot.slane %v280_v54, 1  ;;  %1103 = vmatpush.bf16.msrb.mxu2 %v1811_v31  ;;  %v2148_v19 = vld [vmem:[#allocation8 + $0x22c] sm:$0xf]  ;;  %v1968_v27 = vld [vmem:[#allocation8 + $0x2f4] sm:$0xf0] }
  0xb9   :  { %v298_v5 = vsub.f32 %v290_v57, %v294_v60  ;;  %1116 = vmatpush.bf16.msra.mxu3 %v1907_v32  ;;  %v1799_v53 = vor.u32 %v2131_v46, %v1798_v45  ;;  %v1690_v57 = vld [vmem:[#allocation8 + $0xc0] sm:$0xf]  ;;  %v1779_v22 = vor.u32 %v2124_v15, %v1776_v18  ;;  %v2097_v28 = vld [vmem:[#allocation8 + $0x94] sm:$0xf]  ;;  %v2139_v18 = vld [vmem:[#allocation8 + $0x1e4] sm:$0xf] }
  0xba   :  { %v2524_v11 = vmul.f32 0.125, %v238_v63  ;;  %v270_v12 = vadd.f32 %v269_v0, %v268_v52  ;;  %v2526_v13 = vmul.f32 0.125, %v250_v1  ;;  %v282_v14 = vadd.f32 %v281_v2, %v280_v54  ;;  %v2155_v52 = vld [vmem:[#allocation8 + $0x260] sm:$0xf0]  ;;  %v2104_v1 = vld [vmem:[#allocation8 + $0xc8] sm:$0xf0] }
  0xbb   :  { %v302_v17 = vmax.f32 %v298_v5, 0.0  ;;  %1078 = vmatpush.bf16.msra.mxu0 %v1607_v42  ;;  %v1895_v54 = vor.u32 %v2155_v52, %v1894_v47  ;;  %1091 = vmatpush.bf16.msrb.mxu1 %v1703_v44  ;;  %v1595_v0 = vor.u32 %v2080_v56, %v1594_v55  ;;  %v1786_v2 = vld [vmem:[#allocation8 + $0x180] sm:$0xf]  ;;  %v1691_v10 = vor.u32 %v2104_v1, %v1690_v57  ;;  %v2145_v40 = vld [vmem:[#allocation8 + $0x214] sm:$0xf] }
  0xbc   :  { %v289_v23 = vmul.f32 0.125, %v270_v12  ;;  %v293_v24 = vmul.f32 %v2524_v11, %v2524_v11  ;;  %v291_v25 = vmul.f32 0.125, %v282_v14  ;;  %v295_v26 = vmul.f32 %v2526_v13, %v2526_v13  ;;  %1104 = vmatpush.bf16.msrb.mxu2 %v1799_v53  ;;  %v1882_v5 = vld [vmem:[#allocation8 + $0x240] sm:$0xf]  ;;  %v1680_v14 = vld [vmem:[#allocation8 + $0xb4] sm:$0xf0] }
  0xbd   :  { %v2532_v29 = vadd.f32 1e-05, %v302_v17  ;;  %v2534_v30 = vpop.f32.mrf.mxu3  ;;  %1117 = vmatpush.bf16.msra.mxu3 %v1895_v54  ;;  %v1787_v12 = vor.u32 %v2128_v3, %v1786_v2  ;;  %v1883_v17 = vor.u32 %v2152_v6, %v1882_v5  ;;  %v1683_v21 = vor.u32 %v2100_v7, %v1680_v14  ;;  %v1668_v31 = vld [vmem:[#allocation8 + $0x9c] sm:$0xf0]  ;;  %v2169_v46 = vld [vmem:[#allocation8 + $0x2d4] sm:$0xf] }
  0xbe   :  { %v297_v35 = vsub.f32 %v289_v23, %v293_v24  ;;  %v299_v36 = vsub.f32 %v291_v25, %v295_v26  ;;  %v251_v37 = vrot.slane %v2534_v30, 4  ;;  %v264_v38 = vmul.f32 %v2534_v30, %v2534_v30  ;;  %v1872_v23 = vld [vmem:[#allocation8 + $0x234] sm:$0xf0]  ;;  %v2172_v24 = vld [vmem:[#allocation8 + $0x2ec] sm:$0xf] }
  0xbf   :  { %2222 = vrsqrt.f32 %v2532_v29  ;;  %1079 = vmatpush.bf16.msra.mxu0 %v1595_v0  ;;  %1092 = vmatpush.bf16.msrb.mxu1 %v1691_v10  ;;  %v1875_v26 = vor.u32 %v2148_v19, %v1872_v23  ;;  %v1971_v33 = vor.u32 %v2172_v24, %v1968_v27  ;;  %v1671_v34 = vor.u32 %v2097_v28, %v1668_v31  ;;  %v1860_v41 = vld [vmem:[#allocation8 + $0x21c] sm:$0xf0]  ;;  %v2118_v55 = vld [vmem:[#allocation8 + $0x13c] sm:$0xf]  ;;  %v1752_v56 = vld [vmem:[#allocation8 + $0x144] sm:$0xf0] }
  0xc0   :  { %v301_v48 = vmax.f32 %v297_v35, 0.0  ;;  %v303_v49 = vmax.f32 %v299_v36, 0.0  ;;  %v252_v50 = vadd.f32 %v251_v37, %v2534_v30  ;;  %v283_v51 = vrot.slane %v264_v38, 4  ;;  %1105 = vmatpush.bf16.msrb.mxu2 %v1787_v12  ;;  %v2121_v35 = vld [vmem:[#allocation8 + $0x154] sm:$0xf] }
  0xc1   :  { %1118 = vmatpush.bf16.msra.mxu3 %v1883_v17  ;;  %v1764_v36 = vld [vmem:[#allocation8 + $0x15c] sm:$0xf0]  ;;  %v1863_v45 = vor.u32 %v2145_v40, %v1860_v41  ;;  %v1848_v0 = vld [vmem:[#allocation8 + $0x204] sm:$0xf0]  ;;  %v2166_v1 = vld [vmem:[#allocation8 + $0x2bc] sm:$0xf]  ;;  %vm326_vm2 = vweird.f32 %v2532_v29 }
  0xc2   :  { %v2540_v60 = vadd.f32 1e-05, %v301_v48  ;;  %v2542_v61 = vadd.f32 1e-05, %v303_v49  ;;  %v253_v62 = vrot.slane %v252_v50, 2  ;;  %v284_v63 = vadd.f32 %v283_v51, %v264_v38 }
  0xc3   :  { %1124 = vmatpush.bf16.msrb.mxu0 %v1683_v21  ;;  %1137 = vmatpush.bf16.msra.mxu1 %v1779_v22  ;;  %v1767_v38 = vor.u32 %v2121_v35, %v1764_v36  ;;  %v1956_v47 = vld [vmem:[#allocation8 + $0x2dc] sm:$0xf0]  ;;  %v1656_v51 = vld [vmem:[#allocation8 + $0x84] sm:$0xf0]  ;;  %v2091_v7 = vld [vmem:[#allocation8 + $0x64] sm:$0xf] }
  0xc4   :  { %v254_v4 = vadd.f32 %v253_v62, %v252_v50  ;;  %v285_v8 = vrot.slane %v284_v63, 2  ;;  %2224 = vrsqrt.f32 %v2542_v61  ;;  %1150 = vmatpush.bf16.msra.mxu2 %v1875_v26  ;;  %v2094_v50 = vld [vmem:[#allocation8 + $0x7c] sm:$0xf]  ;;  %v1959_v53 = vor.u32 %v2169_v46, %v1956_v47  ;;  %v1944_v6 = vld [vmem:[#allocation8 + $0x2c4] sm:$0xf0] }
  0xc5   :  { %v231_v9 = vpop.f32.mrf.mxu3  ;;  %2226 = vrsqrt.f32 %v2540_v60  ;;  %v2549_v42 = vpop.eup %2222  ;;  %1163 = vmatpush.bf16.msrb.mxu3 %v1971_v33  ;;  %v1659_v54 = vor.u32 %v2094_v50, %v1656_v51  ;;  %v1755_v62 = vor.u32 %v2118_v55, %v1752_v56  ;;  %v2115_v10 = vld [vmem:[#allocation8 + $0x124] sm:$0xf]  ;;  %v1836_v19 = vld [vmem:[#allocation8 + $0x1ec] sm:$0xf0]  ;;  %v2088_v27 = vld [vmem:[#allocation8 + $0x4c] sm:$0xf]  ;;  %vm336_vm4 = vweird.f32 %v2542_v61 }
  0xc6   :  { %v255_v16 = vrot.slane %v254_v4, 1  ;;  %v286_v20 = vadd.f32 %v285_v8, %v284_v63  ;;  %v2142_v63 = vld [vmem:[#allocation8 + $0x1fc] sm:$0xf]  ;;  %v321_v2 = vmul.f32 %v2549_v42, %v2532_v29  ;;  %v1947_v8 = vor.u32 %v2166_v1, %v1944_v6  ;;  %v1644_v9 = vld [vmem:[#allocation8 + $0x6c] sm:$0xf0] }
  0xc7   :  { %1125 = vmatpush.bf16.msrb.mxu0 %v1671_v34  ;;  %1138 = vmatpush.bf16.msra.mxu1 %v1767_v38  ;;  %v1851_v5 = vor.u32 %v2142_v63, %v1848_v0  ;;  %v1647_v15 = vor.u32 %v2091_v7, %v1644_v9  ;;  %v1839_v23 = vor.u32 %v2139_v18, %v1836_v19  ;;  %v2163_v24 = vld [vmem:[#allocation8 + $0x2a4] sm:$0xf]  ;;  %v1632_v28 = vld [vmem:[#allocation8 + $0x54] sm:$0xf0]  ;;  %v2112_v31 = vld [vmem:[#allocation8 + $0x10c] sm:$0xf]  ;;  %vm327_vm3 = vweird.f32 %v2549_v42 }
  0xc8   :  { %v256_v25 = vadd.f32 %v255_v16, %v254_v4  ;;  %v287_v32 = vrot.slane %v286_v20, 1  ;;  %1151 = vmatpush.bf16.msra.mxu2 %v1863_v45  ;;  %v1740_v16 = vld [vmem:[#allocation8 + $0x12c] sm:$0xf0]  ;;  %v1635_v33 = vor.u32 %v2088_v27, %v1632_v28  ;;  %v1728_v34 = vld [vmem:[#allocation8 + $0x114] sm:$0xf0]  ;;  %vm2584_vm6 = vmor %vm326_vm2, %vm327_vm3  ;;  %vm316_vm9 = vweird.f32 %v2540_v60 }
  0xc9   :  { %1164 = vmatpush.bf16.msrb.mxu3 %v1959_v53  ;;  %v1743_v17 = vor.u32 %v2115_v10, %v1740_v16  ;;  %v2136_v35 = vld [vmem:[#allocation8 + $0x1cc] sm:$0xf]  ;;  %v1824_v36 = vld [vmem:[#allocation8 + $0x1d4] sm:$0xf0]  ;;  %v1731_v38 = vor.u32 %v2112_v31, %v1728_v34  ;;  %v1620_v50 = vld [vmem:[#allocation8 + $0x3c] sm:$0xf0] }
  0xca   :  { %v2547_v37 = vmul.f32 0.125, %v256_v25  ;;  %v288_v44 = vadd.f32 %v287_v32, %v286_v20  ;;  %v2551_v48 = vpop.eup %2224  ;;  %v322_v20 = vmul.f32 %v2549_v42, %v321_v2  ;;  %v1932_v25 = vld [vmem:[#allocation8 + $0x2ac] sm:$0xf0]  ;;  %v2160_v40 = vld [vmem:[#allocation8 + $0x28c] sm:$0xf]  ;;  %v1827_v47 = vor.u32 %v2136_v35, %v1824_v36 }
  0xcb   :  { %v2555_v57 = vpop.eup %2226  ;;  %v331_v3 = vmul.f32 %v2551_v48, %v2542_v61  ;;  %1126 = vmatpush.bf16.msrb.mxu0 %v1659_v54  ;;  %1139 = vmatpush.bf16.msra.mxu1 %v1755_v62  ;;  %v1935_v26 = vor.u32 %v2163_v24, %v1932_v25  ;;  %v1920_v41 = vld [vmem:[#allocation8 + $0x294] sm:$0xf0]  ;;  %v2109_v51 = vld [vmem:[#allocation8 + $0xf4] sm:$0xf]  ;;  %v1812_v54 = vld [vmem:[#allocation8 + $0x1bc] sm:$0xf0]  ;;  %vm337_vm5 = vweird.f32 %v2551_v48 }
  0xcc   :  { %v296_v49 = vmul.f32 %v2547_v37, %v2547_v37  ;;  %v292_v52 = vmul.f32 0.125, %v288_v44  ;;  %v311_v12 = vmul.f32 %v2555_v57, %v2540_v60  ;;  %1152 = vmatpush.bf16.msra.mxu2 %v1851_v5  ;;  %v2085_v44 = vld [vmem:[#allocation8 + $0x34] sm:$0xf]  ;;  %v323_v45 = vmul.f32 0.5, %v322_v20  ;;  %v1908_v63 = vld [vmem:[#allocation8 + $0x27c] sm:$0xf0]  ;;  %vm2596_vm10 = vmor %vm336_vm4, %vm337_vm5 }
  0xcd   :  { %v332_v21 = vmul.f32 %v2551_v48, %v331_v3  ;;  %1165 = vmatpush.bf16.msrb.mxu3 %v1947_v8  ;;  %v2133_v53 = vld [vmem:[#allocation8 + $0x1b4] sm:$0xf]  ;;  %v1623_v56 = vor.u32 %v2085_v44, %v1620_v50  ;;  %v2082_v2 = vld [vmem:[#allocation8 + $0x1c] sm:$0xf]  ;;  %v1608_v3 = vld [vmem:[#allocation8 + $0x24] sm:$0xf0]  ;;  %vm317_vm7 = vweird.f32 %v2555_v57 }
  0xce   :  { %v300_v4 = vsub.f32 %v292_v52, %v296_v49  ;;  %v312_v32 = vmul.f32 %v2555_v57, %v311_v12  ;;  %v1923_v49 = vor.u32 %v2160_v40, %v1920_v41  ;;  %v1716_v52 = vld [vmem:[#allocation8 + $0xfc] sm:$0xf0]  ;;  %v2157_v62 = vld [vmem:[#allocation8 + $0x274] sm:$0xf]  ;;  %v1815_v1 = vor.u32 %v2133_v53, %v1812_v54  ;;  %v1704_v7 = vld [vmem:[#allocation8 + $0xe4] sm:$0xf0] }
  0xcf   :  { %1127 = vmatpush.bf16.msrb.mxu0 %v1647_v15  ;;  %1140 = vmatpush.bf16.msra.mxu1 %v1743_v17  ;;  %v333_v46 = vmul.f32 0.5, %v332_v21  ;;  %v1719_v0 = vor.u32 %v2109_v51, %v1716_v52  ;;  %v1911_v6 = vor.u32 %v2157_v62, %v1908_v63  ;;  %v2130_v8 = vld [vmem:[#allocation8 + $0x19c] sm:$0xf]  ;;  %v1800_v9 = vld [vmem:[#allocation8 + $0x1a4] sm:$0xf0]  ;;  %v324_v10 = vsub.f32 1.5, %v323_v45  ;;  %vm2603_vm11 = vmor %vm316_vm9, %vm317_vm7 }
  0xd0   :  { %v304_v14 = vmax.f32 %v300_v4, 0.0  ;;  %1153 = vmatpush.bf16.msra.mxu2 %v1839_v23  ;;  %v313_v55 = vmul.f32 0.5, %v312_v32  ;;  %v2106_v4 = vld [vmem:[#allocation8 + $0xdc] sm:$0xf]  ;;  %v1896_v16 = vld [vmem:[#allocation8 + $0x264] sm:$0xf0]  ;;  %v1611_v18 = vor.u32 %v2082_v2, %v1608_v3  ;;  %v1803_v21 = vor.u32 %v2130_v8, %v1800_v9 }
  0xd1   :  { %1166 = vmatpush.bf16.msrb.mxu3 %v1935_v26  ;;  %v334_v12 = vsub.f32 1.5, %v333_v46  ;;  %v2154_v15 = vld [vmem:[#allocation8 + $0x25c] sm:$0xf]  ;;  %v1707_v20 = vor.u32 %v2106_v4, %v1704_v7  ;;  %v2079_v23 = vld [vmem:[#allocation8 + $0x4] sm:$0xf]  ;;  %v325_v32 = vmul.f32 %v2549_v42, %v324_v10  ;;  %v2420_v63 = vmov 0  }
  0xd2   :  { %v2565_v22 = vadd.f32 1e-05, %v304_v14  ;;  %v314_v17 = vsub.f32 1.5, %v313_v55  ;;  %v1596_v24 = vld [vmem:[#allocation8 + $0xc] sm:$0xf0]  ;;  %v1899_v26 = vor.u32 %v2154_v15, %v1896_v16  ;;  %v127_v62 = vld [vmem:[%s2720_s1] sm:$0xff]  ;;  %2216 = vset.pattern.permute.xlu0 %v2420_v63 }
  0xd3   :  { %1128 = vmatpush.bf16.msrb.mxu0 %v1635_v33  ;;  %1141 = vmatpush.bf16.msra.mxu1 %v1731_v38  ;;  %v2103_v25 = vld [vmem:[#allocation8 + $0xc4] sm:$0xf]  ;;  %v1692_v27 = vld [vmem:[#allocation8 + $0xcc] sm:$0xf0]  ;;  %v335_v33 = vmul.f32 %v2551_v48, %v334_v12  ;;  %v1599_v41 = vor.u32 %v2079_v23, %v1596_v24  ;;  %v365_v12 = vld [vmem:[#allocation7] sm:$0xf] }
  0xd4   :  { %2228 = vrsqrt.f32 %v2565_v22  ;;  %1154 = vmatpush.bf16.msra.mxu2 %v1827_v47  ;;  %v2127_v28 = vld [vmem:[#allocation8 + $0x184] sm:$0xf]  ;;  %v1788_v31 = vld [vmem:[#allocation8 + $0x18c] sm:$0xf0]  ;;  %v315_v40 = vmul.f32 %v2555_v57, %v314_v17  ;;  %v1695_v45 = vor.u32 %v2103_v25, %v1692_v27  ;;  %vm346_vm12 = vweird.f32 %v2565_v22  ;;  %1231 = vperm.xlu0 %2216, %v127_v62  }
  0xd5   :  { %1167 = vmatpush.bf16.msrb.mxu3 %v1923_v49  ;;  %v2151_v35 = vld [vmem:[#allocation8 + $0x244] sm:$0xf]  ;;  %v1884_v36 = vld [vmem:[#allocation8 + $0x24c] sm:$0xf0]  ;;  %v1791_v46 = vor.u32 %v2127_v28, %v1788_v31  ;;  %v329_v49 = vsel %vm2584_vm6, %v2549_v42, %v325_v32  ;;  %v339_v60 = vsel %vm2596_vm10, %v2551_v48, %v335_v33  ;;  %v2421_v16 = vmov 2  }
  0xd6   :  { %v1887_v47 = vor.u32 %v2151_v35, %v1884_v36  ;;  %v319_v51 = vsel %vm2603_vm11, %v2555_v57, %v315_v40  ;;  %v354_v52 = vrot.slane %v329_v49, 7  ;;  %v355_v53 = vrot.slane %v339_v60, 6  ;;  %v305_v48 = vld [vmem:[%s2722_s3] sm:$0xf]  ;;  %2218 = vset.pattern.permute.xlu1 %v2421_v16  ;;  %v1686_v25 = vld [vmem:[#allocation8 + $0xb0] sm:$0xf] }
  0xd7   :  { %1129 = vmatpush.bf16.msrb.mxu0 %v1623_v56  ;;  %1142 = vmatpush.bf16.msra.mxu1 %v1719_v0  ;;  %v2102_v32 = vld [vmem:[#allocation8 + $0xb8] sm:$0xf0]  ;;  %v1782_v33 = vld [vmem:[#allocation8 + $0x170] sm:$0xf]  ;;  %v2093_v16 = vld [vmem:[#allocation8 + $0x70] sm:$0xf0] }
  0xd8   :  { %1155 = vmatpush.bf16.msra.mxu2 %v1815_v1  ;;  %1269 = vperm.xlu1 %2218, %v127_v62   ;;  %v2150_v35 = vld [vmem:[#allocation8 + $0x238] sm:$0xf0] }
  0xd9   :  { %1168 = vmatpush.bf16.msrb.mxu3 %v1911_v6  ;;  %v2174_v36 = vld [vmem:[#allocation8 + $0x2f8] sm:$0xf0] }
  0xda   :  { %v2569_v5 = vpop.eup %2228 }
  0xdb   :  { %v341_v14 = vmul.f32 %v2569_v5, %v2565_v22  ;;  %1130 = vmatpush.bf16.msrb.mxu0 %v1611_v18  ;;  %vm347_vm8 = vweird.f32 %v2569_v5  ;;  %1143 = vmatpush.bf16.msra.mxu1 %v1707_v20  ;;  %v358_v22 = vsel %vm357_vm14, %v319_v51, %v354_v52  ;;  %v2422_v18 = vmov 1   ;;  %v2099_v51 = vld [vmem:[#allocation8 + $0xa0] sm:$0xf0] }
  0xdc   :  { %1156 = vmatpush.bf16.msra.mxu2 %v1803_v21  ;;  %vm348_vm13 = vmor %vm346_vm12, %vm347_vm8  ;;  %2217 = vset.pattern.permute.xlu0 %v2422_v18  ;;  %v1746_v18 = vld [vmem:[#allocation8 + $0x128] sm:$0xf] }
  0xdd   :  { %v342_v19 = vmul.f32 %v2569_v5, %v341_v14  ;;  %1169 = vmatpush.bf16.msrb.mxu3 %v1899_v26  ;;  %1250 = vperm.xlu0 %2217, %v127_v62  }
  0xdf   :  { %v343_v34 = vmul.f32 0.5, %v342_v19  ;;  %1131 = vmatpush.bf16.msrb.mxu0 %v1599_v41  ;;  %1144 = vmatpush.bf16.msra.mxu1 %v1695_v45  ;;  %v2423_v41 = vmov 3  }
  0xe0   :  { %1157 = vmatpush.bf16.msra.mxu2 %v1791_v46  ;;  %2219 = vset.pattern.permute.xlu1 %v2423_v41  ;;  %v1687_v46 = vor.u32 %v2102_v32, %v1686_v25  ;;  %v2090_v25 = vld [vmem:[#allocation8 + $0x58] sm:$0xf0]  ;;  %v1830_v32 = vld [vmem:[#allocation8 + $0x1d0] sm:$0xf] }
  0xe1   :  { %v344_v44 = vsub.f32 1.5, %v343_v34  ;;  %1170 = vmatpush.bf16.msrb.mxu3 %v1887_v47  ;;  %v2126_v34 = vld [vmem:[#allocation8 + $0x178] sm:$0xf0]  ;;  %1288 = vperm.xlu1 %2219, %v127_v62   ;;  %v2171_v62 = vld [vmem:[#allocation8 + $0x2e0] sm:$0xf0] }
  0xe2   :  { %v1783_v29 = vor.u32 %v2126_v34, %v1782_v33  ;;  %v2138_v33 = vld [vmem:[#allocation8 + $0x1d8] sm:$0xf0]  ;;  %v1926_v34 = vld [vmem:[#allocation8 + $0x290] sm:$0xf] }
  0xe3   :  { %v345_v61 = vmul.f32 %v2569_v5, %v344_v44 }
  0xe5   :  { %v349_v42 = vsel %vm348_vm13, %v2569_v5, %v345_v61  ;;  %v1674_v61 = vld [vmem:[#allocation8 + $0x98] sm:$0xf]  ;;  %2220 = vset.pattern.permute.xlu0 %v2423_v41  ;;  %v2111_v41 = vld [vmem:[#allocation8 + $0x100] sm:$0xf0] }
  0xe6   :  { %v356_v54 = vrot.slane %v349_v42, 5  ;;  %v1675_v63 = vor.u32 %v2099_v51, %v1674_v61  ;;  %v1614_v61 = vld [vmem:[#allocation8 + $0x20] sm:$0xf]  ;;  %v2084_v51 = vld [vmem:[#allocation8 + $0x28] sm:$0xf0] }
  0xe8   :  { %v360_v55 = vsel %vm359_vm15, %v355_v53, %v356_v54 }
  0xe9   :  { %v362_v57 = vsel %vm361_vm0, %v358_v22, %v360_v55  ;;  %v2123_v22 = vld [vmem:[#allocation8 + $0x160] sm:$0xf0]  ;;  %v1866_v55 = vld [vmem:[#allocation8 + $0x218] sm:$0xf] }
  0xea   :  { %v364_v56 = vmul.f32 %v362_v57, %v305_v48  ;;  %v1770_v48 = vld [vmem:[#allocation8 + $0x158] sm:$0xf]  ;;  %v2147_v57 = vld [vmem:[#allocation8 + $0x220] sm:$0xf0] }
  0xec   :  { %v367_v0 = vperm.slane %v364_v56, 0  ;;  %v368_v1 = vperm.slane %v364_v56, 1  ;;  %v369_v2 = vperm.slane %v364_v56, 2  ;;  %v370_v3 = vperm.slane %v364_v56, 3  ;;  %v1962_v56 = vld [vmem:[#allocation8 + $0x2d8] sm:$0xf] }
  0xee   :  { %v376_v4 = vmul.f32 %v368_v1, %v2520_v43  ;;  %v377_v5 = vmul.f32 %v369_v2, %v2526_v13  ;;  %v378_v6 = vmul.f32 %v370_v3, %v2547_v37  ;;  %v375_v7 = vmul.f32 %v367_v0, %v2524_v11 }
  0xef   :  { %v394_v13 = vmul.f32 %v370_v3, %v2534_v30  ;;  %v391_v11 = vmul.f32 %v367_v0, %v2508_v58  ;;  %v392_v37 = vmul.f32 %v368_v1, %v2502_v39  ;;  %v393_v19 = vmul.f32 %v369_v2, %v2510_v59  ;;  %v1878_v30 = vld [vmem:[#allocation8 + $0x230] sm:$0xf]  ;;  %v1662_v1 = vld [vmem:[#allocation8 + $0x80] sm:$0xf]  ;;  %v2096_v2 = vld [vmem:[#allocation8 + $0x88] sm:$0xf0] }
  0xf0   :  { %v383_v8 = vrot.slane %v376_v4, 7  ;;  %v384_v9 = vrot.slane %v377_v5, 6  ;;  %v385_v10 = vrot.slane %v378_v6, 5  ;;  %v1974_v58 = vld [vmem:[#allocation8 + $0x2f0] sm:$0xf]  ;;  %v1879_v53 = vor.u32 %v2150_v35, %v1878_v30 }
  0xf1   :  { %v1975_v54 = vor.u32 %v2174_v36, %v1974_v58  ;;  %v1771_v0 = vor.u32 %v2123_v22, %v1770_v48  ;;  %v1867_v3 = vor.u32 %v2147_v57, %v1866_v55  ;;  %v1963_v4 = vor.u32 %v2171_v62, %v1962_v56  ;;  %v1758_v5 = vld [vmem:[#allocation8 + $0x140] sm:$0xf]  ;;  %v2120_v6 = vld [vmem:[#allocation8 + $0x148] sm:$0xf0]  ;;  %v2162_v30 = vld [vmem:[#allocation8 + $0x298] sm:$0xf0] }
  0xf2   :  { %v386_v14 = vsel %vm357_vm14, %v375_v7, %v383_v8  ;;  %v387_v15 = vsel %vm359_vm15, %v384_v9, %v385_v10  ;;  %v1854_v7 = vld [vmem:[#allocation8 + $0x200] sm:$0xf]  ;;  %v2144_v8 = vld [vmem:[#allocation8 + $0x208] sm:$0xf0]  ;;  %v1626_v36 = vld [vmem:[#allocation8 + $0x38] sm:$0xf] }
  0xf3   :  { %v388_v17 = vsel %vm361_vm0, %v386_v14, %v387_v15  ;;  %v1950_v9 = vld [vmem:[#allocation8 + $0x2c0] sm:$0xf]  ;;  %v2168_v10 = vld [vmem:[#allocation8 + $0x2c8] sm:$0xf0]  ;;  %v1759_v14 = vor.u32 %v2120_v6, %v1758_v5  ;;  %v1650_v15 = vld [vmem:[#allocation8 + $0x68] sm:$0xf] }
  0xf4   :  { %v390_v43 = vsub.f32 %v365_v12, %v388_v17  ;;  %v1663_v12 = vor.u32 %v2096_v2, %v1662_v1  ;;  %v1855_v17 = vor.u32 %v2144_v8, %v1854_v7  ;;  %v1710_v48 = vld [vmem:[#allocation8 + $0xe0] sm:$0xf]  ;;  %v2108_v22 = vld [vmem:[#allocation8 + $0xe8] sm:$0xf0]  ;;  %v1602_v1 = vld [vmem:[#allocation8 + $0x8] sm:$0xf] }
  0xf5   :  { %v1806_v55 = vld [vmem:[#allocation8 + $0x1a0] sm:$0xf]  ;;  %v2132_v57 = vld [vmem:[#allocation8 + $0x1a8] sm:$0xf0]  ;;  %v2081_v2 = vld [vmem:[#allocation8 + $0x10] sm:$0xf0] }
  0xf6   :  { %v399_v20 = vperm.slane %v390_v43, 3  ;;  %v396_v21 = vperm.slane %v390_v43, 0  ;;  %v397_v23 = vperm.slane %v390_v43, 1  ;;  %v398_v24 = vperm.slane %v390_v43, 2  ;;  %v1902_v56 = vld [vmem:[#allocation8 + $0x260] sm:$0xf] }
  0xf7   :  { %v1951_v43 = vor.u32 %v2168_v10, %v1950_v9  ;;  %v2156_v62 = vld [vmem:[#allocation8 + $0x268] sm:$0xf0]  ;;  %v1698_v5 = vld [vmem:[#allocation8 + $0xc8] sm:$0xf]  ;;  %v2105_v6 = vld [vmem:[#allocation8 + $0xd0] sm:$0xf0] }
  0xf8   :  { %v407_v26 = vadd.f32 %v399_v20, %v394_v13  ;;  %v404_v27 = vadd.f32 %v396_v21, %v391_v11  ;;  %v405_v28 = vadd.f32 %v397_v23, %v392_v37  ;;  %v406_v31 = vadd.f32 %v398_v24, %v393_v19  ;;  %v2117_v13 = vld [vmem:[#allocation8 + $0x130] sm:$0xf0]  ;;  %v1842_v11 = vld [vmem:[#allocation8 + $0x1e8] sm:$0xf]  ;;  %v1638_v24 = vld [vmem:[#allocation8 + $0x50] sm:$0xf] }
  0xf9   :  { %v2141_v37 = vld [vmem:[#allocation8 + $0x1f0] sm:$0xf0]  ;;  %v1938_v19 = vld [vmem:[#allocation8 + $0x2a8] sm:$0xf]  ;;  %v1651_v21 = vor.u32 %v2093_v16, %v1650_v15  ;;  %v1747_v23 = vor.u32 %v2117_v13, %v1746_v18  ;;  %v1639_v35 = vor.u32 %v2090_v25, %v1638_v24  ;;  %v2180_v18 = vld [vmem:[#allocation11 + $0x28] sm:$0xff] }
  0xfa   :  { %vm408_vm1 = vcmp.ge.f32.partialorder %v404_v27, 0.0  ;;  %v412_v39 = vmul.f32 0.01, %v404_v27  ;;  %vm409_vm2 = vcmp.ge.f32.partialorder %v405_v28, 0.0  ;;  %v413_v59 = vmul.f32 0.01, %v405_v28 }
  0xfb   :  { %vm410_vm3 = vcmp.ge.f32.partialorder %v406_v31, 0.0  ;;  %v414_v38 = vmul.f32 0.01, %v406_v31  ;;  %vm411_vm4 = vcmp.ge.f32.partialorder %v407_v26, 0.0  ;;  %v415_v40 = vmul.f32 0.01, %v407_v26 }
  0xfc   :  { %v416_v44 = vsel %vm408_vm1, %v404_v27, %v412_v39  ;;  %v417_v45 = vsel %vm409_vm2, %v405_v28, %v413_v59  ;;  %v2165_v20 = vld [vmem:[#allocation8 + $0x2b0] sm:$0xf0]  ;;  %v1734_v28 = vld [vmem:[#allocation8 + $0x110] sm:$0xf]  ;;  %v2087_v39 = vld [vmem:[#allocation8 + $0x40] sm:$0xf0]  ;;  %v1831_v59 = vor.u32 %v2138_v33, %v1830_v32 }
  0xfd   :  { %v2636_v47 = vpack.c.bf16 %v416_v44, %v416_v44  ;;  %v2638_v49 = vpack.c.bf16 %v417_v45, %v417_v45  ;;  %v418_v50 = vsel %vm410_vm3, %v406_v31, %v414_v38  ;;  %v419_v60 = vsel %vm411_vm4, %v407_v26, %v415_v40  ;;  %v2114_v31 = vld [vmem:[#allocation8 + $0x118] sm:$0xf0]  ;;  %v1722_v40 = vld [vmem:[#allocation8 + $0xf8] sm:$0xf]  ;;  %v2135_v45 = vld [vmem:[#allocation8 + $0x1c0] sm:$0xf0] }
  0xfe   :  { %v2640_v42 = vpack.c.bf16 %v418_v50, %v418_v50  ;;  %v2642_v52 = vpack.c.bf16 %v419_v60, %v419_v60  ;;  %v1843_v26 = vor.u32 %v2141_v37, %v1842_v11  ;;  %v1939_v27 = vor.u32 %v2165_v20, %v1938_v19  ;;  %v1818_v44 = vld [vmem:[#allocation8 + $0x1b8] sm:$0xf]  ;;  %v1794_v7 = vld [vmem:[#allocation8 + $0x188] sm:$0xf]  ;;  %v2129_v8 = vld [vmem:[#allocation8 + $0x190] sm:$0xf0] }
  0xff   :  { %1080 = vmatmul.bf16.vlgmr.msra.gmra.mxu0 %v2636_v47  ;;  %1093 = vmatmul.bf16.vlgmr.msrb.gmra.mxu1 %v2638_v49  ;;  %v1735_v58 = vor.u32 %v2114_v31, %v1734_v28  ;;  %v1927_v38 = vor.u32 %v2162_v30, %v1926_v34  ;;  %v1627_v50 = vor.u32 %v2087_v39, %v1626_v36  ;;  %v1890_v9 = vld [vmem:[#allocation8 + $0x248] sm:$0xf]  ;;  %v2153_v10 = vld [vmem:[#allocation8 + $0x250] sm:$0xf0]  ;;  %v2178_v11 = vld [vmem:[#allocation11 + $0x18] sm:$0xff] }
 0x100   :  { %1106 = vmatmul.bf16.vlgmr.msrb.gmra.mxu2 %v2640_v42  ;;  %1119 = vmatmul.bf16.vlgmr.msra.gmra.mxu3 %v2642_v52  ;;  %v1723_v60 = vor.u32 %v2111_v41, %v1722_v40  ;;  %v1795_v15 = vor.u32 %v2129_v8, %v1794_v7  ;;  %v1891_v16 = vor.u32 %v2153_v10, %v1890_v9  ;;  %v2179_v13 = vld [vmem:[#allocation11 + $0x20] sm:$0xff]  ;;  %v2190_v37 = vld [vmem:[#allocation11 + $0x78] sm:$0xff]  ;;  %v2177_v19 = vld [vmem:[#allocation11 + $0x10] sm:$0xff] }
 0x101   :  { %1176 = vmatpush.bf16.msra.mxu0 %v1687_v46  ;;  %1189 = vmatpush.bf16.msrb.mxu1 %v1783_v29  ;;  %v1914_v46 = vld [vmem:[#allocation8 + $0x278] sm:$0xf]  ;;  %v2159_v29 = vld [vmem:[#allocation8 + $0x280] sm:$0xf0]  ;;  %v2656_v24 = vld [vmem:[#allocation10] sm:$0x7] }
 0x102   :  { %1202 = vmatpush.bf16.msrb.mxu2 %v1879_v53  ;;  %1215 = vmatpush.bf16.msra.mxu3 %v1975_v54  ;;  %v1819_v53 = vor.u32 %v2135_v45, %v1818_v44  ;;  %v1915_v54 = vor.u32 %v2159_v29, %v1914_v46  ;;  %v2189_v20 = vld [vmem:[#allocation11 + $0x70] sm:$0xff]  ;;  %v554_v28 = vperm.slane %v2656_v24, 0  ;;  %v2664_v33 = vld [vmem:[%s2725_s6] ss:$4 sm:$0x7] }
 0x103   :  { %v2184_v30 = vld [vmem:[#allocation11 + $0x48] sm:$0xff]  ;;  %v1235_v39 = vperm.slane %v2664_v33, 0 }
 0x104   :  { %v2671_v36 = vld [vmem:[%s2725_s6 + $0x1] ss:$4 sm:$0x7]  ;;  %v2677_v40 = vld [vmem:[%s2725_s6 + $0x2] ss:$4 sm:$0x7] }
 0x105   :  { %1177 = vmatpush.bf16.msra.mxu0 %v1675_v63  ;;  %1190 = vmatpush.bf16.msrb.mxu1 %v1771_v0  ;;  %v1615_v63 = vor.u32 %v2084_v51, %v1614_v61  ;;  %v1711_v0 = vor.u32 %v2108_v22, %v1710_v48  ;;  %v1254_v44 = vperm.slane %v2671_v36, 0  ;;  %v1273_v61 = vperm.slane %v2677_v40, 0  ;;  %v2194_v48 = vld [vmem:[#allocation11 + $0x98] sm:$0xff]  ;;  %v2192_v9 = vld [vmem:[#allocation11 + $0x88] sm:$0xff] }
 0x106   :  { %1203 = vmatpush.bf16.msrb.mxu2 %v1867_v3  ;;  %1216 = vmatpush.bf16.msra.mxu3 %v1963_v4  ;;  %v1807_v3 = vor.u32 %v2132_v57, %v1806_v55  ;;  %v1903_v4 = vor.u32 %v2156_v62, %v1902_v56 }
 0x109   :  { %1178 = vmatpush.bf16.msra.mxu0 %v1663_v12  ;;  %1191 = vmatpush.bf16.msrb.mxu1 %v1759_v14  ;;  %v1603_v12 = vor.u32 %v2081_v2, %v1602_v1  ;;  %v1699_v14 = vor.u32 %v2105_v6, %v1698_v5 }
 0x10a   :  { %1204 = vmatpush.bf16.msrb.mxu2 %v1855_v17  ;;  %1217 = vmatpush.bf16.msra.mxu3 %v1951_v43  ;;  %v2182_v17 = vld [vmem:[#allocation11 + $0x38] sm:$0xff]  ;;  %v2181_v43 = vld [vmem:[#allocation11 + $0x30] sm:$0xff] }
 0x10d   :  { %1179 = vmatpush.bf16.msra.mxu0 %v1651_v21  ;;  %1192 = vmatpush.bf16.msrb.mxu1 %v1747_v23  ;;  %v2188_v21 = vld [vmem:[#allocation11 + $0x68] sm:$0xff]  ;;  %v2198_v23 = vld [vmem:[#allocation11 + $0xb8] sm:$0xff] }
 0x10e   :  { %1205 = vmatpush.bf16.msrb.mxu2 %v1843_v26  ;;  %1218 = vmatpush.bf16.msra.mxu3 %v1939_v27  ;;  %v2185_v26 = vld [vmem:[#allocation11 + $0x50] sm:$0xff] }
 0x10f   :  { %1132 = vmatmul.bf16.vlgmr.msrb.gmra.mxu0 %v2636_v47  ;;  %1145 = vmatmul.bf16.vlgmr.msra.gmra.mxu1 %v2638_v49  ;;  %v2197_v27 = vld [vmem:[#allocation11 + $0xb0] sm:$0xff] }
 0x110   :  { %1158 = vmatmul.bf16.vlgmr.msra.gmra.mxu2 %v2640_v42  ;;  %1171 = vmatmul.bf16.vlgmr.msrb.gmra.mxu3 %v2642_v52 }
 0x111   :  { %1180 = vmatpush.bf16.msra.mxu0 %v1639_v35  ;;  %1193 = vmatpush.bf16.msrb.mxu1 %v1735_v58  ;;  %v2196_v35 = vld [vmem:[#allocation11 + $0xa8] sm:$0xff] }
 0x112   :  { %1206 = vmatpush.bf16.msrb.mxu2 %v1831_v59  ;;  %1219 = vmatpush.bf16.msra.mxu3 %v1927_v38  ;;  %v2183_v59 = vld [vmem:[#allocation11 + $0x40] sm:$0xff] }
 0x113   :  { %v2195_v38 = vld [vmem:[#allocation11 + $0xa0] sm:$0xff] }
 0x115   :  { %1181 = vmatpush.bf16.msra.mxu0 %v1627_v50  ;;  %1194 = vmatpush.bf16.msrb.mxu1 %v1723_v60  ;;  %v2685_v50 = vld [vmem:[%s2725_s6 + $0x3] ss:$4 sm:$0x7] }
 0x116   :  { %1207 = vmatpush.bf16.msrb.mxu2 %v1819_v53  ;;  %1220 = vmatpush.bf16.msra.mxu3 %v1915_v54  ;;  %v1292_v57 = vperm.slane %v2685_v50, 0 }
 0x119   :  { %1182 = vmatpush.bf16.msra.mxu0 %v1615_v63  ;;  %1195 = vmatpush.bf16.msrb.mxu1 %v1711_v0  ;;  %v2193_v0 = vld [vmem:[#allocation11 + $0x90] sm:$0xff] }
 0x11a   :  { %1208 = vmatpush.bf16.msrb.mxu2 %v1807_v3  ;;  %1221 = vmatpush.bf16.msra.mxu3 %v1903_v4  ;;  %v555_v3 = vperm.slane %v2656_v24, 1 }
 0x11d   :  { %1183 = vmatpush.bf16.msra.mxu0 %v1603_v12  ;;  %1196 = vmatpush.bf16.msrb.mxu1 %v1699_v14  ;;  %v2191_v14 = vld [vmem:[#allocation11 + $0x80] sm:$0xff] }
 0x11e   :  { %1209 = vmatpush.bf16.msrb.mxu2 %v1795_v15  ;;  %1222 = vmatpush.bf16.msra.mxu3 %v1891_v16  ;;  %v1236_v15 = vperm.slane %v2664_v33, 1 }
 0x120   :  { %1184 = vmatmul.bf16.vlgmr.msra.gmra.mxu0 %v2636_v47  ;;  %1197 = vmatmul.bf16.vlgmr.msrb.gmra.mxu1 %v2638_v49  ;;  %v2176_v47 = vld [vmem:[#allocation11 + $0x8] sm:$0xff]  ;;  %v2175_v49 = vld [vmem:[#allocation11] sm:$0xff] }
 0x121   :  { %1512 = vmatpush.bf16.msrb.mxu0 %v2182_v17  ;;  %1210 = vmatmul.bf16.vlgmr.msrb.gmra.mxu2 %v2640_v42  ;;  %v2187_v42 = vld [vmem:[#allocation11 + $0x60] sm:$0xff]  ;;  %v1255_v17 = vperm.slane %v2671_v36, 1 }
 0x122   :  { %1223 = vmatmul.bf16.vlgmr.msra.gmra.mxu3 %v2642_v52  ;;  %1525 = vmatpush.bf16.msra.mxu1 %v2190_v37  ;;  %v2186_v52 = vld [vmem:[#allocation11 + $0x58] sm:$0xff] }
 0x123   :  { %1538 = vmatpush.bf16.msra.mxu2 %v2198_v23 }
 0x125   :  { %1513 = vmatpush.bf16.msrb.mxu0 %v2181_v43 }
 0x126   :  { %1526 = vmatpush.bf16.msra.mxu1 %v2189_v20  ;;  %v1274_v20 = vperm.slane %v2677_v40, 1 }
 0x127   :  { %1539 = vmatpush.bf16.msra.mxu2 %v2197_v27 }
 0x129   :  { %1514 = vmatpush.bf16.msrb.mxu0 %v2180_v18 }
 0x12a   :  { %1527 = vmatpush.bf16.msra.mxu1 %v2188_v21 }
 0x12b   :  { %1540 = vmatpush.bf16.msra.mxu2 %v2196_v35  ;;  %v556_v35 = vperm.slane %v2656_v24, 2  ;;  %v1275_v24 = vperm.slane %v2677_v40, 2 }
 0x12d   :  { %1515 = vmatpush.bf16.msrb.mxu0 %v2179_v13 }
 0x12e   :  { %1528 = vmatpush.bf16.msra.mxu1 %v2187_v42 }
 0x12f   :  { %1541 = vmatpush.bf16.msra.mxu2 %v2195_v38 }
 0x131   :  { %1516 = vmatpush.bf16.msrb.mxu0 %v2178_v11 }
 0x132   :  { %1529 = vmatpush.bf16.msra.mxu1 %v2186_v52  ;;  %v1293_v52 = vperm.slane %v2685_v50, 1 }
 0x133   :  { %1542 = vmatpush.bf16.msra.mxu2 %v2194_v48 }
 0x135   :  { %1517 = vmatpush.bf16.msrb.mxu0 %v2177_v19 }
 0x136   :  { %1530 = vmatpush.bf16.msra.mxu1 %v2185_v26 }
 0x137   :  { %1543 = vmatpush.bf16.msra.mxu2 %v2193_v0 }
 0x139   :  { %1518 = vmatpush.bf16.msrb.mxu0 %v2176_v47 }
 0x13a   :  { %1531 = vmatpush.bf16.msra.mxu1 %v2184_v30 }
 0x13b   :  { %1544 = vmatpush.bf16.msra.mxu2 %v2192_v9 }
 0x13d   :  { %1519 = vmatpush.bf16.msrb.mxu0 %v2175_v49 }
 0x13e   :  { %1532 = vmatpush.bf16.msra.mxu1 %v2183_v59 }
 0x13f   :  { %1545 = vmatpush.bf16.msra.mxu2 %v2191_v14 }
 0x146   :  { %v2658_v25 = vpop.permute.xlu0 %1231 }
 0x147   :  { %v1241_v60 = vmul.f32 %v1235_v39, %v2658_v25  ;;  %v1242_v19 = vmul.f32 %v1236_v15, %v2658_v25 }
 0x14a   :  { %v2666_v34 = vpop.permute.xlu1 %1269 }
 0x14b   :  { %v1279_v62 = vmul.f32 %v1273_v61, %v2666_v34  ;;  %v1280_v26 = vmul.f32 %v1274_v20, %v2666_v34 }
 0x14f   :  { %v2680_v45 = vpop.permute.xlu0 %1250 }
 0x150   :  { %v1260_v55 = vmul.f32 %v1254_v44, %v2680_v45  ;;  %v1261_v42 = vmul.f32 %v1255_v17, %v2680_v45 }
 0x153   :  { %v2691_v56 = vpop.permute.xlu1 %1288 }
 0x154   :  { %v1298_v2 = vmul.f32 %v1292_v57, %v2691_v56 }
 0x17c   :  { %v1081_v31 = vpop.f32.mrf.mxu0  ;;  %v1094_v32 = vpop.f32.mrf.mxu1 }
 0x17d   :  { %v1082_v58 = vadd.f32 %v1081_v31, %v554_v28  ;;  %v1299_v28 = vmul.f32 %v1293_v52, %v2691_v56 }
 0x17f   :  { %v1095_v41 = vadd.f32 %v1094_v32, %v1082_v58 }
 0x183   :  { %v1107_v46 = vpop.f32.mrf.mxu2  ;;  %v1120_v29 = vpop.f32.mrf.mxu3 }
 0x184   :  { %v1108_v51 = vadd.f32 %v1107_v46, %v1095_v41  ;;  %v1083_v53 = vpop.f32.mrf.mxu0  ;;  %v1096_v54 = vpop.f32.mrf.mxu1 }
 0x186   :  { %v1121_v22 = vadd.f32 %v1120_v29, %v1108_v51  ;;  %v1237_v29 = vperm.slane %v2664_v33, 2 }
 0x188   :  { %v1244_v63 = vadd.f32 %v1241_v60, %v1121_v22  ;;  %v1256_v60 = vperm.slane %v2671_v36, 2  ;;  %v1243_v57 = vmul.f32 %v1237_v29, %v2658_v25  ;;  %v1281_v36 = vmul.f32 %v1275_v24, %v2666_v34  ;;  %v2221_v34 = vld [vmem:[%s2728_s9] ss:$0 sm:$0xff] }
 0x18a   :  { %v1263_v1 = vadd.f32 %v1260_v55, %v1244_v63  ;;  %v1294_v63 = vperm.slane %v2685_v50, 2 }
 0x18b   :  { %v1109_v4 = vpop.f32.mrf.mxu2  ;;  %v1122_v5 = vpop.f32.mrf.mxu3 }
 0x18c   :  { %v1282_v6 = vadd.f32 %v1279_v62, %v1263_v1  ;;  %v1133_v7 = vpop.f32.mrf.mxu0  ;;  %v1146_v8 = vpop.f32.mrf.mxu1  ;;  %v1262_v62 = vmul.f32 %v1256_v60, %v2680_v45  ;;  %v1300_v1 = vmul.f32 %v1294_v63, %v2691_v56 }
 0x18d   :  { %v1134_v12 = vadd.f32 %v1133_v7, %v555_v3 }
 0x18e   :  { %v1301_v10 = vadd.f32 %v1298_v2, %v1282_v6 }
 0x18f   :  { %v1147_v43 = vadd.f32 %v1146_v8, %v1134_v12 }
 0x190   :  { %vm1304_vm5 = vcmp.ge.f32.partialorder %v1301_v10, 0.0  ;;  %v1307_v16 = vmul.f32 0.01, %v1301_v10 }
 0x192   :  { %v1310_v18 = vsel %vm1304_vm5, %v1301_v10, %v1307_v16 }
 0x193   :  { %v1159_v13 = vpop.f32.mrf.mxu2  ;;  %v1172_v11 = vpop.f32.mrf.mxu3  ;;  %v1313_v37 = vpack.c.bf16 %v1310_v18, %v1310_v18 }
 0x194   :  { %v1160_v47 = vadd.f32 %v1159_v13, %v1147_v43  ;;  %v1135_v21 = vpop.f32.mrf.mxu0  ;;  %v1148_v49 = vpop.f32.mrf.mxu1 }
 0x195   :  { %1520 = vmatmul.bf16.vlgmr.msrb.gmra.mxu0 %v1313_v37 }
 0x196   :  { %v1173_v23 = vadd.f32 %v1172_v11, %v1160_v47 }
 0x198   :  { %v1245_v27 = vadd.f32 %v1242_v19, %v1173_v23 }
 0x19a   :  { %v1264_v31 = vadd.f32 %v1261_v42, %v1245_v27 }
 0x19b   :  { %v1161_v32 = vpop.f32.mrf.mxu2  ;;  %v1174_v30 = vpop.f32.mrf.mxu3 }
 0x19c   :  { %v1283_v58 = vadd.f32 %v1280_v26, %v1264_v31 }
 0x19d   :  { %v1185_v39 = vpop.f32.mrf.mxu0  ;;  %v1198_v59 = vpop.f32.mrf.mxu1 }
 0x19e   :  { %v1302_v38 = vadd.f32 %v1299_v28, %v1283_v58  ;;  %v1186_v41 = vadd.f32 %v1185_v39, %v556_v35 }
 0x1a0   :  { %vm1305_vm6 = vcmp.ge.f32.partialorder %v1302_v38, 0.0  ;;  %v1308_v44 = vmul.f32 0.01, %v1302_v38  ;;  %v1199_v61 = vadd.f32 %v1198_v59, %v1186_v41 }
 0x1a2   :  { %v1311_v46 = vsel %vm1305_vm6, %v1302_v38, %v1308_v44 }
 0x1a3   :  { %v1314_v51 = vpack.c.bf16 %v1311_v46, %v1311_v46 }
 0x1a4   :  { %v1211_v53 = vpop.f32.mrf.mxu2 }
 0x1a5   :  { %v1224_v54 = vpop.f32.mrf.mxu3  ;;  %v1212_v48 = vadd.f32 %v1211_v53, %v1199_v61  ;;  %v1187_v22 = vpop.f32.mrf.mxu0  ;;  %1533 = vmatmul.bf16.vlgmr.msra.gmra.mxu1 %v1314_v51 }
 0x1a6   :  { %v1200_v55 = vpop.f32.mrf.mxu1 }
 0x1a7   :  { %v1225_v0 = vadd.f32 %v1224_v54, %v1212_v48 }
 0x1a9   :  { %v1246_v33 = vadd.f32 %v1243_v57, %v1225_v0 }
 0x1ab   :  { %v1265_v2 = vadd.f32 %v1262_v62, %v1246_v33 }
 0x1ac   :  { %v1213_v3 = vpop.f32.mrf.mxu2 }
 0x1ad   :  { %v1226_v4 = vpop.f32.mrf.mxu3  ;;  %v1284_v5 = vadd.f32 %v1281_v36, %v1265_v2 }
 0x1af   :  { %v1303_v6 = vadd.f32 %v1300_v1, %v1284_v5 }
 0x1b1   :  { %vm1306_vm7 = vcmp.ge.f32.partialorder %v1303_v6, 0.0  ;;  %v1309_v7 = vmul.f32 0.01, %v1303_v6 }
 0x1b3   :  { %v1312_v40 = vsel %vm1306_vm7, %v1303_v6, %v1309_v7 }
 0x1b4   :  { %v1315_v8 = vpack.c.bf16 %v1312_v40, %v1312_v40 }
 0x1b6   :  { %1546 = vmatmul.bf16.vlgmr.msra.gmra.mxu2 %v1315_v8 }
 0x212   :  { %v1521_v25 = vpop.f32.mrf.mxu0 }
 0x213   :  { %v1522_v10 = vadd.f32 %v2221_v34, %v1521_v25 }
 0x21a   :  { %v1523_v45 = vpop.f32.mrf.mxu0 }
 0x222   :  { %v1534_v9 = vpop.f32.mrf.mxu1 }
 0x223   :  { %v1535_v56 = vadd.f32 %v1534_v9, %v1522_v10 }
 0x22a   :  { %v1536_v50 = vpop.f32.mrf.mxu1 }
 0x239   :  { %v1547_v12 = vpop.f32.mrf.mxu2 }
 0x23a   :  { %v1548_v14 = vadd.f32 %v1547_v12, %v1535_v56 }
 0x23c   :  { %1551 = vst [vmem:[#allocation13] sm:$0xff] %v1548_v14 }
 0x23d   :  { %1562 = dma.vmem_to_hbm [thread:$0]  %s1558_s13, 128, %s1560_s16, [#allocation4]  }
 0x241   :  { %v1549_v15 = vpop.f32.mrf.mxu2 }
 0x242   :  { %2406 = dma.done.wait [#allocation4], 128  }
 0x243   :  { %2407 = vsyncadd [#allocation4], 4294967168 }
 0x244   :  { %1567 = vsyncpa [#allocation3], 1 }
 0x245   :  { %1568 = vsyncpa [#allocation6], 1 }
 0x246   :  { %1569 = vsyncpa [#allocation9], 1 }
 0x247   :  { %1570 = vsyncpa [#allocation12], 1 }
 0x248   :  { %1571 = vsyncpa [#allocation4], 1 }

</bundles_post_ra>
